<compile_context>
chip_gen: v6e
topology: v6e:2x2x1
jax: 0.10.0
libtpu: 0.0.40
codegen_flags: <defaults>
</compile_context>

<pallas_src>
import functools
import math

import jax
import jax.numpy as jnp
from jax.experimental import pallas as pl
from jax.experimental.pallas import tpu as pltpu

# ------------------------------ config --------------------------------------
VOCAB_SIZE = 64          # config.vocab_size
VOCAB_PAD = 128          # lane-dense padded vocab for the logits store
EMBED_DIM = 32           # config.embedding_dim  (n_embd)
N_LAYER = 3              # num_layers
N_HEAD = 4               # num_heads
HEAD_DIM = EMBED_DIM // N_HEAD
N_INNER = 4 * EMBED_DIM  # GPT-2 default mlp width
MAX_POS = 32             # n_positions (only first T rows used)
PAD_TOKEN_ID = 0         # config.pad_token_id
LN_EPS = 1e-5

VEC_LANES = 128
ROWS_PER_LAYER = 8       # ln1_g, ln1_b, ln2_g, ln2_b, bqkv, bo, fc_b, proj_b
VEC_ROWS = ROWS_PER_LAYER * N_LAYER + 2   # + lnf_g, lnf_b

VMEM_SPEC = pl.BlockSpec(memory_space=pltpu.MemorySpace.VMEM)


# ------------------------------ in-kernel helpers ----------------------------
def _layernorm(x, g, b):
    mu = jnp.mean(x, axis=-1, keepdims=True)
    var = jnp.mean(jnp.square(x - mu), axis=-1, keepdims=True)
    return (x - mu) * jax.lax.rsqrt(var + LN_EPS) * g + b


def _gelu_new(x):
    # GPT-2 "gelu_new" (tanh approximation)
    c = math.sqrt(2.0 / math.pi)
    return 0.5 * x * (1.0 + jnp.tanh(c * (x + 0.044715 * x * x * x)))


# ------------------------------ fused kernel --------------------------------
def _tfree_fused_kernel(h_ref, mask_ref, *rest, compute_loss):
    if compute_loss:
        labels_ref, vec_ref, mat32_ref, mlp_proj_ref, logits_ref = rest
    else:
        vec_ref, mat32_ref, mlp_proj_ref, logits_ref = rest
        labels_ref = None

    T, D = h_ref.shape
    Dh = HEAD_DIM
    scale = 1.0 / math.sqrt(Dh)

    hid = h_ref[...]                                         # [T, D] f32

    # ---- causal + pad mask for THIS batch block (built in-kernel) ----------
    i_idx = jax.lax.broadcasted_iota(jnp.int32, (T, T), 0)
    j_idx = jax.lax.broadcasted_iota(jnp.int32, (T, T), 1)
    key_keep = mask_ref[0] > 0.5                             # [1, T] broadcasts over rows
    allowed = jnp.logical_and(j_idx <= i_idx, key_keep)
    attn_bias = jnp.where(allowed, 0.0, -1e9)                # additive, GPT-2 semantics

    def vrow(r, width):                                      # static-index row load
        return vec_ref[r:r + 1, :width]                      # [1, width]

    # ---- transformer layers (fully unrolled; all weights VMEM-resident) -----
    # TODO(synk): GPT-2 dropout layers omitted (deterministic eval-mode forward).
    for l in range(N_LAYER):
        base = l * ROWS_PER_LAYER
        ln1_g = vrow(base + 0, D)
        ln1_b = vrow(base + 1, D)
        ln2_g = vrow(base + 2, D)
        ln2_b = vrow(base + 3, D)
        bqkv = vrow(base + 4, 3 * D)                         # [1, 96]
        bo = vrow(base + 5, D)
        fc_b = vrow(base + 6, N_INNER)                       # [1, 128]
        pj_b = vrow(base + 7, D)

        attn_mat = mat32_ref[l]                              # [D, 128] = [qkv_w | out_w]
        wqkv = attn_mat[:, :3 * D]                           # [D, 3D]
        wo = attn_mat[:, 3 * D:3 * D + D]                    # [D, D]
        fc_w = mat32_ref[N_LAYER + l]                        # [D, 4D]
        pj_w = mlp_proj_ref[l]                               # [4D, D]

        # ----- attention block: fused qkv, per-head score/PV, fused out-proj
        x = _layernorm(hid, ln1_g, ln1_b)
        qkv = jnp.dot(x, wqkv, preferred_element_type=jnp.float32) + bqkv   # [T, 3D]
        head_outs = []
        for hh in range(N_HEAD):
            q = qkv[:, hh * Dh:(hh + 1) * Dh]
            k = qkv[:, D + hh * Dh:D + (hh + 1) * Dh]
            v = qkv[:, 2 * D + hh * Dh:2 * D + (hh + 1) * Dh]
            s = jnp.einsum('qd,kd->qk', q, k,
                           preferred_element_type=jnp.float32) * scale + attn_bias
            s = s - jnp.max(s, axis=-1, keepdims=True)
            p = jnp.exp(s)
            p = p * pl.reciprocal(jnp.sum(p, axis=-1, keepdims=True), approx=True)
            head_outs.append(jnp.dot(p, v, preferred_element_type=jnp.float32))
        attn = jnp.concatenate(head_outs, axis=-1)           # [T, D]
        hid = hid + jnp.dot(attn, wo, preferred_element_type=jnp.float32) + bo

        # ----- mlp block (lane-dense 128-wide hidden)
        x = _layernorm(hid, ln2_g, ln2_b)
        u = _gelu_new(jnp.dot(x, fc_w, preferred_element_type=jnp.float32) + fc_b)
        hid = hid + jnp.dot(u, pj_w, preferred_element_type=jnp.float32) + pj_b

    # ---- final LN + lm_head (padded to 128 lanes -> unmasked lane-dense store)
    lnf_g = vrow(ROWS_PER_LAYER * N_LAYER + 0, D)
    lnf_b = vrow(ROWS_PER_LAYER * N_LAYER + 1, D)
    hid = _layernorm(hid, lnf_g, lnf_b)
    lm_head = mat32_ref[2 * N_LAYER]                         # [D, VOCAB_PAD]
    logits = jnp.dot(hid, lm_head, preferred_element_type=jnp.float32)  # [T, VOCAB_PAD]

    if compute_loss:
        # BCE-with-logits over the real vocab columns; per-row sums are folded
        # into padded column VOCAB_SIZE of the logits slab (no extra output).
        y = labels_ref[...]                                  # [T, VOCAB_PAD] (zero-padded)
        col = jax.lax.broadcasted_iota(jnp.int32, (T, VOCAB_PAD), 1)
        valid = (col < VOCAB_SIZE).astype(jnp.float32)
        elt = (jnp.maximum(logits, 0.0) - logits * y
               + jnp.log1p(jnp.exp(-jnp.abs(logits)))) * valid
        row_loss = jnp.sum(elt, axis=1, keepdims=True)       # [T, 1]
        logits = logits + row_loss * (col == VOCAB_SIZE).astype(jnp.float32)

    logits_ref[...] = logits                                 # single [T, 128] store


# ------------------------------ params --------------------------------------
def _pack_params(layers, lnf_g, lnf_b, lm_head_w):
    """Pack HF-GPT-2-layout weights into 3 contiguous VMEM slabs (init-time)."""
    D = EMBED_DIM

    def pad_row(v):
        v = v.reshape(-1).astype(jnp.float32)
        return jnp.zeros((VEC_LANES,), jnp.float32).at[:v.shape[0]].set(v)

    # slab 1: every LN gamma/beta and every bias, one 128-lane row each
    rows = []
    for lr in layers:
        rows += [pad_row(lr['ln1_g']), pad_row(lr['ln1_b']),
                 pad_row(lr['ln2_g']), pad_row(lr['ln2_b']),
                 pad_row(lr['attn_b']), pad_row(lr['attn_proj_b']),
                 pad_row(lr['fc_b']), pad_row(lr['proj_b'])]
    rows += [pad_row(lnf_g), pad_row(lnf_b)]
    vec_tbl = jnp.stack(rows)                                # [VEC_ROWS, 128]

    # slab 2: all [D, 128]-shaped matrices
    #   rows 0..L-1 : [attn qkv_w (D,3D) | attn out_proj_w (D,D)]
    #   rows L..2L-1: fc_w (D, 4D)
    #   row  2L     : lm_head^T zero-padded to (D, VOCAB_PAD)
    mat_rows = []
    for lr in layers:
        mat_rows.append(jnp.concatenate([lr['attn_w'], lr['attn_proj_w']], axis=1))
    for lr in layers:
        mat_rows.append(lr['fc_w'])
    lm_pad = jnp.zeros((D, VOCAB_PAD), jnp.float32).at[:, :VOCAB_SIZE].set(lm_head_w.T)
    mat_rows.append(lm_pad)
    mat32 = jnp.stack(mat_rows)                              # [2L+1, D, 128]

    # slab 3: MLP down-projections
    mlp_proj = jnp.stack([lr['proj_w'] for lr in layers])    # [L, 4D, D]

    return {'vec_tbl': vec_tbl, 'mat32': mat32, 'mlp_proj': mlp_proj}


def init_params(key):
    def normal(k, shape, std=0.02):
        return std * jax.random.normal(k, shape, jnp.float32)

    keys = iter(jax.random.split(key, 64))
    wte = normal(next(keys), (VOCAB_SIZE, EMBED_DIM))        # self.embedding
    wpe = normal(next(keys), (MAX_POS, EMBED_DIM))
    # HF behavior: lm_head stays tied to the *original* GPT-2 wte, which
    # set_input_embeddings() does not replace -> independent weight here.
    lm_head_w = normal(next(keys), (VOCAB_SIZE, EMBED_DIM))

    layers = []
    for _ in range(N_LAYER):
        layers.append({
            'ln1_g': jnp.ones((EMBED_DIM,), jnp.float32),
            'ln1_b': jnp.zeros((EMBED_DIM,), jnp.float32),
            'attn_w': normal(next(keys), (EMBED_DIM, 3 * EMBED_DIM)),
            'attn_b': jnp.zeros((3 * EMBED_DIM,), jnp.float32),
            'attn_proj_w': normal(next(keys), (EMBED_DIM, EMBED_DIM)),
            'attn_proj_b': jnp.zeros((EMBED_DIM,), jnp.float32),
            'ln2_g': jnp.ones((EMBED_DIM,), jnp.float32),
            'ln2_b': jnp.zeros((EMBED_DIM,), jnp.float32),
            'fc_w': normal(next(keys), (EMBED_DIM, N_INNER)),
            'fc_b': jnp.zeros((N_INNER,), jnp.float32),
            'proj_w': normal(next(keys), (N_INNER, EMBED_DIM)),
            'proj_b': jnp.zeros((EMBED_DIM,), jnp.float32),
        })
    lnf_g = jnp.ones((EMBED_DIM,), jnp.float32)
    lnf_b = jnp.zeros((EMBED_DIM,), jnp.float32)

    return {'wte': wte, 'wpe': wpe,
            'packed': _pack_params(layers, lnf_g, lnf_b, lm_head_w)}


# ------------------------------ forward -------------------------------------
def tfree_forward(params, input_ids, labels=None):
    B, T = input_ids.shape
    BT = B * T
    compute_loss = labels is not None

    # attention_mask = (input_ids != pad_token_id), per-batch key keep-mask
    attn_mask = (input_ids != PAD_TOKEN_ID).astype(jnp.float32).reshape(B, 1, T)

    # embedding gather + position embedding (glue)
    h0 = (params['wte'][input_ids] + params['wpe'][:T][None]
          ).reshape(BT, EMBED_DIM).astype(jnp.float32)

    data_inputs = [h0, attn_mask]
    in_specs = [
        pl.BlockSpec((T, EMBED_DIM), lambda b: (b, 0)),      # per-batch hidden rows
        pl.BlockSpec((1, 1, T), lambda b: (b, 0, 0)),        # per-batch key mask
    ]
    if compute_loss:
        lab = labels.reshape(BT, VOCAB_SIZE).astype(jnp.float32)
        labels_pad = jnp.pad(lab, ((0, 0), (0, VOCAB_PAD - VOCAB_SIZE)))
        data_inputs.append(labels_pad)
        in_specs.append(pl.BlockSpec((T, VOCAB_PAD), lambda b: (b, 0)))

    packed = params['packed']
    weights = (packed['vec_tbl'], packed['mat32'], packed['mlp_proj'])
    weight_specs = [VMEM_SPEC] * len(weights)                # 3 whole-array slabs

    kernel = functools.partial(_tfree_fused_kernel, compute_loss=compute_loss)
    logits_pad = pl.pallas_call(
        kernel,
        grid=(B,),
        out_shape=jax.ShapeDtypeStruct((BT, VOCAB_PAD), jnp.float32),
        in_specs=in_specs + weight_specs,
        out_specs=pl.BlockSpec((T, VOCAB_PAD), lambda b: (b, 0)),
        compiler_params=pltpu.CompilerParams(
            dimension_semantics=("parallel",)),              # v7x: 2 TCs split the batch
    )(*data_inputs, *weights)

    logits = logits_pad[:, :VOCAB_SIZE].reshape(B, T, VOCAB_SIZE)
    loss = None
    if compute_loss:
        # per-row BCE sums were folded into padded column VOCAB_SIZE
        loss = jnp.sum(logits_pad[:, VOCAB_SIZE]) / float(BT * VOCAB_SIZE)
    return logits, loss


# ------------------------------ main ----------------------------------------
if __name__ == "__main__":
    root = jax.random.PRNGKey(0)
    k_params, k_ids, k_labels = jax.random.split(root, 3)

    params = init_params(k_params)

    B, T = 2, 8
    input_ids = jax.random.randint(k_ids, (B, T), 0, VOCAB_SIZE, dtype=jnp.int32)
    # multi-hot BCE targets, same shape as logits
    labels = (jax.random.uniform(k_labels, (B, T, VOCAB_SIZE)) < 0.1
              ).astype(jnp.float32)

    fwd = jax.jit(tfree_forward)
    logits, loss = fwd(params, input_ids, labels)
    jax.block_until_ready((logits, loss))

    assert logits.shape == (B, T, VOCAB_SIZE)
    assert loss.shape == ()
    assert bool(jnp.isfinite(loss))
    print("KERNEL_OK")
</pallas_src>

<mosaic_0001>
module attributes {stable_mosaic.version = 11 : i64} {
  func.func @_tfree_fused_kernel(%arg0: i32, %arg1: memref<8x32xf32, #tpu.memory_space<vmem>>, %arg2: memref<1x1x8xf32, #tpu.memory_space<vmem>>, %arg3: memref<8x128xf32, #tpu.memory_space<vmem>>, %arg4: memref<26x128xf32, #tpu.memory_space<vmem>>, %arg5: memref<7x32x128xf32, #tpu.memory_space<vmem>>, %arg6: memref<3x128x32xf32, #tpu.memory_space<vmem>>, %arg7: memref<8x128xf32, #tpu.memory_space<vmem>>) attributes {dimension_semantics = [#tpu.dimension_semantics<parallel>], iteration_bounds = array<i64: 2>, scalar_prefetch = 0 : i64, scratch_operands = 0 : i64, tpu.core_type = #tpu.core_type<tc>, window_params = [{transform_indices = @transform_0, window_bounds = array<i64: 8, 32>}, {transform_indices = @transform_1, window_bounds = array<i64: 1, 1, 8>}, {transform_indices = @transform_2, window_bounds = array<i64: 8, 128>}, {pipeline_mode = #tpu.pipeline_mode<synchronous>, transform_indices = @transform_3, window_bounds = array<i64: 26, 128>}, {pipeline_mode = #tpu.pipeline_mode<synchronous>, transform_indices = @transform_4, window_bounds = array<i64: 7, 32, 128>}, {pipeline_mode = #tpu.pipeline_mode<synchronous>, transform_indices = @transform_5, window_bounds = array<i64: 3, 128, 32>}, {transform_indices = @transform_6, window_bounds = array<i64: 8, 128>}]} {
    %c0 = arith.constant 0 : index
    %c0_0 = arith.constant 0 : index
    %0 = vector.load %arg1[%c0, %c0_0] : memref<8x32xf32, #tpu.memory_space<vmem>>, vector<8x32xf32>
    %1 = tpu.iota {dimensions = array<i32: 0>} : vector<8x8xi32>
    %2 = tpu.iota {dimensions = array<i32: 1>} : vector<8x8xi32>
    %c0_1 = arith.constant 0 : index
    %c0_2 = arith.constant 0 : index
    %c0_3 = arith.constant 0 : index
    %3 = vector.load %arg2[%c0_1, %c0_2, %c0_3] : memref<1x1x8xf32, #tpu.memory_space<vmem>>, vector<1x1x8xf32>
    %4 = vector.shape_cast %3 : vector<1x1x8xf32> to vector<1x8xf32>
    %cst = arith.constant 5.000000e-01 : f32
    %5 = vector.broadcast %cst : f32 to vector<1x8xf32>
    %6 = arith.cmpf ogt, %4, %5 : vector<1x8xf32>
    %7 = arith.cmpi sle, %2, %1 : vector<8x8xi32>
    %8 = vector.broadcast %6 : vector<1x8xi1> to vector<8x8xi1>
    %9 = arith.andi %7, %8 : vector<8x8xi1>
    %cst_4 = arith.constant 0.000000e+00 : f32
    %cst_5 = arith.constant -1.000000e+09 : f32
    %10 = vector.broadcast %cst_4 : f32 to vector<8x8xf32>
    %11 = vector.broadcast %cst_5 : f32 to vector<8x8xf32>
    %12 = arith.select %9, %10, %11 : vector<8x8xi1>, vector<8x8xf32>
    %c0_6 = arith.constant 0 : index
    %c0_7 = arith.constant 0 : index
    %13 = vector.load %arg4[%c0_6, %c0_7] : memref<26x128xf32, #tpu.memory_space<vmem>>, vector<1x32xf32>
    %c1 = arith.constant 1 : index
    %c0_8 = arith.constant 0 : index
    %14 = vector.load %arg4[%c1, %c0_8] : memref<26x128xf32, #tpu.memory_space<vmem>>, vector<1x32xf32>
    %c2 = arith.constant 2 : index
    %c0_9 = arith.constant 0 : index
    %15 = vector.load %arg4[%c2, %c0_9] : memref<26x128xf32, #tpu.memory_space<vmem>>, vector<1x32xf32>
    %c3 = arith.constant 3 : index
    %c0_10 = arith.constant 0 : index
    %16 = vector.load %arg4[%c3, %c0_10] : memref<26x128xf32, #tpu.memory_space<vmem>>, vector<1x32xf32>
    %c4 = arith.constant 4 : index
    %c0_11 = arith.constant 0 : index
    %17 = vector.load %arg4[%c4, %c0_11] : memref<26x128xf32, #tpu.memory_space<vmem>>, vector<1x96xf32>
    %c5 = arith.constant 5 : index
    %c0_12 = arith.constant 0 : index
    %18 = vector.load %arg4[%c5, %c0_12] : memref<26x128xf32, #tpu.memory_space<vmem>>, vector<1x32xf32>
    %c6 = arith.constant 6 : index
    %c0_13 = arith.constant 0 : index
    %19 = vector.load %arg4[%c6, %c0_13] : memref<26x128xf32, #tpu.memory_space<vmem>>, vector<1x128xf32>
    %c7 = arith.constant 7 : index
    %c0_14 = arith.constant 0 : index
    %20 = vector.load %arg4[%c7, %c0_14] : memref<26x128xf32, #tpu.memory_space<vmem>>, vector<1x32xf32>
    %c0_15 = arith.constant 0 : index
    %c0_16 = arith.constant 0 : index
    %c0_17 = arith.constant 0 : index
    %21 = vector.load %arg5[%c0_15, %c0_16, %c0_17] : memref<7x32x128xf32, #tpu.memory_space<vmem>>, vector<1x32x128xf32>
    %22 = vector.shape_cast %21 : vector<1x32x128xf32> to vector<32x128xf32>
    %23 = vector.extract_strided_slice %22 {offsets = [0, 0], sizes = [32, 96], strides = [1, 1]} : vector<32x128xf32> to vector<32x96xf32>
    %24 = vector.extract_strided_slice %22 {offsets = [0, 96], sizes = [32, 32], strides = [1, 1]} : vector<32x128xf32> to vector<32x32xf32>
    %c3_18 = arith.constant 3 : index
    %c0_19 = arith.constant 0 : index
    %c0_20 = arith.constant 0 : index
    %25 = vector.load %arg5[%c3_18, %c0_19, %c0_20] : memref<7x32x128xf32, #tpu.memory_space<vmem>>, vector<1x32x128xf32>
    %26 = vector.shape_cast %25 : vector<1x32x128xf32> to vector<32x128xf32>
    %c0_21 = arith.constant 0 : index
    %c0_22 = arith.constant 0 : index
    %c0_23 = arith.constant 0 : index
    %27 = vector.load %arg6[%c0_21, %c0_22, %c0_23] : memref<3x128x32xf32, #tpu.memory_space<vmem>>, vector<1x128x32xf32>
    %28 = vector.shape_cast %27 : vector<1x128x32xf32> to vector<128x32xf32>
    %cst_24 = arith.constant dense<0.000000e+00> : vector<8xf32>
    %29 = vector.multi_reduction <add>, %0, %cst_24 [1] : vector<8x32xf32> to vector<8xf32>
    %30 = vector.shape_cast %29 : vector<8xf32> to vector<8x1xf32>
    %cst_25 = arith.constant 3.200000e+01 : f32
    %31 = vector.broadcast %cst_25 : f32 to vector<8x1xf32>
    %32 = arith.divf %30, %31 : vector<8x1xf32>
    %33 = vector.broadcast %32 : vector<8x1xf32> to vector<8x32xf32>
    %34 = arith.subf %0, %33 : vector<8x32xf32>
    %35 = arith.mulf %34, %34 : vector<8x32xf32>
    %cst_26 = arith.constant dense<0.000000e+00> : vector<8xf32>
    %36 = vector.multi_reduction <add>, %35, %cst_26 [1] : vector<8x32xf32> to vector<8xf32>
    %37 = vector.shape_cast %36 : vector<8xf32> to vector<8x1xf32>
    %cst_27 = arith.constant 3.200000e+01 : f32
    %38 = vector.broadcast %cst_27 : f32 to vector<8x1xf32>
    %39 = arith.divf %37, %38 : vector<8x1xf32>
    %40 = vector.broadcast %32 : vector<8x1xf32> to vector<8x32xf32>
    %41 = arith.subf %0, %40 : vector<8x32xf32>
    %cst_28 = arith.constant 9.99999974E-6 : f32
    %42 = vector.broadcast %cst_28 : f32 to vector<8x1xf32>
    %43 = arith.addf %39, %42 : vector<8x1xf32>
    %44 = math.rsqrt %43 : vector<8x1xf32>
    %45 = vector.broadcast %44 : vector<8x1xf32> to vector<8x32xf32>
    %46 = arith.mulf %41, %45 : vector<8x32xf32>
    %47 = vector.broadcast %13 : vector<1x32xf32> to vector<8x32xf32>
    %48 = arith.mulf %46, %47 : vector<8x32xf32>
    %49 = vector.broadcast %14 : vector<1x32xf32> to vector<8x32xf32>
    %50 = arith.addf %48, %49 : vector<8x32xf32>
    %cst_29 = arith.constant dense<0.000000e+00> : vector<8x96xf32>
    %51 = tpu.matmul %50, %23, %cst_29 {dimension_numbers = #tpu.dot_dimension_numbers<[1], [0], [0], [1], [0, 0, 1, 1], [], []>} : vector<8x32xf32>, vector<32x96xf32>, vector<8x96xf32> -> vector<8x96xf32>
    %52 = vector.broadcast %17 : vector<1x96xf32> to vector<8x96xf32>
    %53 = arith.addf %51, %52 : vector<8x96xf32>
    %54 = vector.extract_strided_slice %53 {offsets = [0, 0], sizes = [8, 8], strides = [1, 1]} : vector<8x96xf32> to vector<8x8xf32>
    %55 = vector.extract_strided_slice %53 {offsets = [0, 32], sizes = [8, 8], strides = [1, 1]} : vector<8x96xf32> to vector<8x8xf32>
    %56 = vector.extract_strided_slice %53 {offsets = [0, 64], sizes = [8, 8], strides = [1, 1]} : vector<8x96xf32> to vector<8x8xf32>
    "tpu.trace_start"() <{level = 10 : i32, message = "qd,kd->qk"}> : () -> ()
    %cst_30 = arith.constant dense<0.000000e+00> : vector<8x8xf32>
    %57 = tpu.matmul %54, %55, %cst_30 {dimension_numbers = #tpu.dot_dimension_numbers<[1], [1], [0], [0], [0, 0, 1, 0], [], []>} : vector<8x8xf32>, vector<8x8xf32>, vector<8x8xf32> -> vector<8x8xf32>
    "tpu.trace_stop"() : () -> ()
    %cst_31 = arith.constant 0.353553385 : f32
    %58 = vector.broadcast %cst_31 : f32 to vector<8x8xf32>
    %59 = arith.mulf %57, %58 : vector<8x8xf32>
    %60 = arith.addf %59, %12 : vector<8x8xf32>
    %cst_32 = arith.constant dense<0xFF800000> : vector<8xf32>
    %61 = vector.multi_reduction <maximumf>, %60, %cst_32 [1] : vector<8x8xf32> to vector<8xf32>
    %62 = vector.shape_cast %61 : vector<8xf32> to vector<8x1xf32>
    %63 = vector.broadcast %62 : vector<8x1xf32> to vector<8x8xf32>
    %64 = arith.subf %60, %63 : vector<8x8xf32>
    %65 = math.exp %64 : vector<8x8xf32>
    %cst_33 = arith.constant dense<0.000000e+00> : vector<8xf32>
    %66 = vector.multi_reduction <add>, %65, %cst_33 [1] : vector<8x8xf32> to vector<8xf32>
    %67 = vector.shape_cast %66 : vector<8xf32> to vector<8x1xf32>
    %68 = tpu.reciprocal %67 {approx = true} : vector<8x1xf32> -> vector<8x1xf32>
    %69 = vector.broadcast %68 : vector<8x1xf32> to vector<8x8xf32>
    %70 = arith.mulf %65, %69 : vector<8x8xf32>
    %cst_34 = arith.constant dense<0.000000e+00> : vector<8x8xf32>
    %71 = tpu.matmul %70, %56, %cst_34 {dimension_numbers = #tpu.dot_dimension_numbers<[1], [0], [0], [1], [0, 0, 1, 1], [], []>} : vector<8x8xf32>, vector<8x8xf32>, vector<8x8xf32> -> vector<8x8xf32>
    %72 = vector.extract_strided_slice %53 {offsets = [0, 8], sizes = [8, 8], strides = [1, 1]} : vector<8x96xf32> to vector<8x8xf32>
    %73 = vector.extract_strided_slice %53 {offsets = [0, 40], sizes = [8, 8], strides = [1, 1]} : vector<8x96xf32> to vector<8x8xf32>
    %74 = vector.extract_strided_slice %53 {offsets = [0, 72], sizes = [8, 8], strides = [1, 1]} : vector<8x96xf32> to vector<8x8xf32>
    "tpu.trace_start"() <{level = 10 : i32, message = "qd,kd->qk"}> : () -> ()
    %cst_35 = arith.constant dense<0.000000e+00> : vector<8x8xf32>
    %75 = tpu.matmul %72, %73, %cst_35 {dimension_numbers = #tpu.dot_dimension_numbers<[1], [1], [0], [0], [0, 0, 1, 0], [], []>} : vector<8x8xf32>, vector<8x8xf32>, vector<8x8xf32> -> vector<8x8xf32>
    "tpu.trace_stop"() : () -> ()
    %cst_36 = arith.constant 0.353553385 : f32
    %76 = vector.broadcast %cst_36 : f32 to vector<8x8xf32>
    %77 = arith.mulf %75, %76 : vector<8x8xf32>
    %78 = arith.addf %77, %12 : vector<8x8xf32>
    %cst_37 = arith.constant dense<0xFF800000> : vector<8xf32>
    %79 = vector.multi_reduction <maximumf>, %78, %cst_37 [1] : vector<8x8xf32> to vector<8xf32>
    %80 = vector.shape_cast %79 : vector<8xf32> to vector<8x1xf32>
    %81 = vector.broadcast %80 : vector<8x1xf32> to vector<8x8xf32>
    %82 = arith.subf %78, %81 : vector<8x8xf32>
    %83 = math.exp %82 : vector<8x8xf32>
    %cst_38 = arith.constant dense<0.000000e+00> : vector<8xf32>
    %84 = vector.multi_reduction <add>, %83, %cst_38 [1] : vector<8x8xf32> to vector<8xf32>
    %85 = vector.shape_cast %84 : vector<8xf32> to vector<8x1xf32>
    %86 = tpu.reciprocal %85 {approx = true} : vector<8x1xf32> -> vector<8x1xf32>
    %87 = vector.broadcast %86 : vector<8x1xf32> to vector<8x8xf32>
    %88 = arith.mulf %83, %87 : vector<8x8xf32>
    %cst_39 = arith.constant dense<0.000000e+00> : vector<8x8xf32>
    %89 = tpu.matmul %88, %74, %cst_39 {dimension_numbers = #tpu.dot_dimension_numbers<[1], [0], [0], [1], [0, 0, 1, 1], [], []>} : vector<8x8xf32>, vector<8x8xf32>, vector<8x8xf32> -> vector<8x8xf32>
    %90 = vector.extract_strided_slice %53 {offsets = [0, 16], sizes = [8, 8], strides = [1, 1]} : vector<8x96xf32> to vector<8x8xf32>
    %91 = vector.extract_strided_slice %53 {offsets = [0, 48], sizes = [8, 8], strides = [1, 1]} : vector<8x96xf32> to vector<8x8xf32>
    %92 = vector.extract_strided_slice %53 {offsets = [0, 80], sizes = [8, 8], strides = [1, 1]} : vector<8x96xf32> to vector<8x8xf32>
    "tpu.trace_start"() <{level = 10 : i32, message = "qd,kd->qk"}> : () -> ()
    %cst_40 = arith.constant dense<0.000000e+00> : vector<8x8xf32>
    %93 = tpu.matmul %90, %91, %cst_40 {dimension_numbers = #tpu.dot_dimension_numbers<[1], [1], [0], [0], [0, 0, 1, 0], [], []>} : vector<8x8xf32>, vector<8x8xf32>, vector<8x8xf32> -> vector<8x8xf32>
    "tpu.trace_stop"() : () -> ()
    %cst_41 = arith.constant 0.353553385 : f32
    %94 = vector.broadcast %cst_41 : f32 to vector<8x8xf32>
    %95 = arith.mulf %93, %94 : vector<8x8xf32>
    %96 = arith.addf %95, %12 : vector<8x8xf32>
    %cst_42 = arith.constant dense<0xFF800000> : vector<8xf32>
    %97 = vector.multi_reduction <maximumf>, %96, %cst_42 [1] : vector<8x8xf32> to vector<8xf32>
    %98 = vector.shape_cast %97 : vector<8xf32> to vector<8x1xf32>
    %99 = vector.broadcast %98 : vector<8x1xf32> to vector<8x8xf32>
    %100 = arith.subf %96, %99 : vector<8x8xf32>
    %101 = math.exp %100 : vector<8x8xf32>
    %cst_43 = arith.constant dense<0.000000e+00> : vector<8xf32>
    %102 = vector.multi_reduction <add>, %101, %cst_43 [1] : vector<8x8xf32> to vector<8xf32>
    %103 = vector.shape_cast %102 : vector<8xf32> to vector<8x1xf32>
    %104 = tpu.reciprocal %103 {approx = true} : vector<8x1xf32> -> vector<8x1xf32>
    %105 = vector.broadcast %104 : vector<8x1xf32> to vector<8x8xf32>
    %106 = arith.mulf %101, %105 : vector<8x8xf32>
    %cst_44 = arith.constant dense<0.000000e+00> : vector<8x8xf32>
    %107 = tpu.matmul %106, %92, %cst_44 {dimension_numbers = #tpu.dot_dimension_numbers<[1], [0], [0], [1], [0, 0, 1, 1], [], []>} : vector<8x8xf32>, vector<8x8xf32>, vector<8x8xf32> -> vector<8x8xf32>
    %108 = vector.extract_strided_slice %53 {offsets = [0, 24], sizes = [8, 8], strides = [1, 1]} : vector<8x96xf32> to vector<8x8xf32>
    %109 = vector.extract_strided_slice %53 {offsets = [0, 56], sizes = [8, 8], strides = [1, 1]} : vector<8x96xf32> to vector<8x8xf32>
    %110 = vector.extract_strided_slice %53 {offsets = [0, 88], sizes = [8, 8], strides = [1, 1]} : vector<8x96xf32> to vector<8x8xf32>
    "tpu.trace_start"() <{level = 10 : i32, message = "qd,kd->qk"}> : () -> ()
    %cst_45 = arith.constant dense<0.000000e+00> : vector<8x8xf32>
    %111 = tpu.matmul %108, %109, %cst_45 {dimension_numbers = #tpu.dot_dimension_numbers<[1], [1], [0], [0], [0, 0, 1, 0], [], []>} : vector<8x8xf32>, vector<8x8xf32>, vector<8x8xf32> -> vector<8x8xf32>
    "tpu.trace_stop"() : () -> ()
    %cst_46 = arith.constant 0.353553385 : f32
    %112 = vector.broadcast %cst_46 : f32 to vector<8x8xf32>
    %113 = arith.mulf %111, %112 : vector<8x8xf32>
    %114 = arith.addf %113, %12 : vector<8x8xf32>
    %cst_47 = arith.constant dense<0xFF800000> : vector<8xf32>
    %115 = vector.multi_reduction <maximumf>, %114, %cst_47 [1] : vector<8x8xf32> to vector<8xf32>
    %116 = vector.shape_cast %115 : vector<8xf32> to vector<8x1xf32>
    %117 = vector.broadcast %116 : vector<8x1xf32> to vector<8x8xf32>
    %118 = arith.subf %114, %117 : vector<8x8xf32>
    %119 = math.exp %118 : vector<8x8xf32>
    %cst_48 = arith.constant dense<0.000000e+00> : vector<8xf32>
    %120 = vector.multi_reduction <add>, %119, %cst_48 [1] : vector<8x8xf32> to vector<8xf32>
    %121 = vector.shape_cast %120 : vector<8xf32> to vector<8x1xf32>
    %122 = tpu.reciprocal %121 {approx = true} : vector<8x1xf32> -> vector<8x1xf32>
    %123 = vector.broadcast %122 : vector<8x1xf32> to vector<8x8xf32>
    %124 = arith.mulf %119, %123 : vector<8x8xf32>
    %cst_49 = arith.constant dense<0.000000e+00> : vector<8x8xf32>
    %125 = tpu.matmul %124, %110, %cst_49 {dimension_numbers = #tpu.dot_dimension_numbers<[1], [0], [0], [1], [0, 0, 1, 1], [], []>} : vector<8x8xf32>, vector<8x8xf32>, vector<8x8xf32> -> vector<8x8xf32>
    %126 = tpu.concatenate %71, %89, %107, %125 in 1 : vector<8x8xf32>, vector<8x8xf32>, vector<8x8xf32>, vector<8x8xf32> -> vector<8x32xf32>
    %cst_50 = arith.constant dense<0.000000e+00> : vector<8x32xf32>
    %127 = tpu.matmul %126, %24, %cst_50 {dimension_numbers = #tpu.dot_dimension_numbers<[1], [0], [0], [1], [0, 0, 1, 1], [], []>} : vector<8x32xf32>, vector<32x32xf32>, vector<8x32xf32> -> vector<8x32xf32>
    %128 = arith.addf %0, %127 : vector<8x32xf32>
    %129 = vector.broadcast %18 : vector<1x32xf32> to vector<8x32xf32>
    %130 = arith.addf %128, %129 : vector<8x32xf32>
    %cst_51 = arith.constant dense<0.000000e+00> : vector<8xf32>
    %131 = vector.multi_reduction <add>, %130, %cst_51 [1] : vector<8x32xf32> to vector<8xf32>
    %132 = vector.shape_cast %131 : vector<8xf32> to vector<8x1xf32>
    %cst_52 = arith.constant 3.200000e+01 : f32
    %133 = vector.broadcast %cst_52 : f32 to vector<8x1xf32>
    %134 = arith.divf %132, %133 : vector<8x1xf32>
    %135 = vector.broadcast %134 : vector<8x1xf32> to vector<8x32xf32>
    %136 = arith.subf %130, %135 : vector<8x32xf32>
    %137 = arith.mulf %136, %136 : vector<8x32xf32>
    %cst_53 = arith.constant dense<0.000000e+00> : vector<8xf32>
    %138 = vector.multi_reduction <add>, %137, %cst_53 [1] : vector<8x32xf32> to vector<8xf32>
    %139 = vector.shape_cast %138 : vector<8xf32> to vector<8x1xf32>
    %cst_54 = arith.constant 3.200000e+01 : f32
    %140 = vector.broadcast %cst_54 : f32 to vector<8x1xf32>
    %141 = arith.divf %139, %140 : vector<8x1xf32>
    %142 = vector.broadcast %134 : vector<8x1xf32> to vector<8x32xf32>
    %143 = arith.subf %130, %142 : vector<8x32xf32>
    %cst_55 = arith.constant 9.99999974E-6 : f32
    %144 = vector.broadcast %cst_55 : f32 to vector<8x1xf32>
    %145 = arith.addf %141, %144 : vector<8x1xf32>
    %146 = math.rsqrt %145 : vector<8x1xf32>
    %147 = vector.broadcast %146 : vector<8x1xf32> to vector<8x32xf32>
    %148 = arith.mulf %143, %147 : vector<8x32xf32>
    %149 = vector.broadcast %15 : vector<1x32xf32> to vector<8x32xf32>
    %150 = arith.mulf %148, %149 : vector<8x32xf32>
    %151 = vector.broadcast %16 : vector<1x32xf32> to vector<8x32xf32>
    %152 = arith.addf %150, %151 : vector<8x32xf32>
    %cst_56 = arith.constant dense<0.000000e+00> : vector<8x128xf32>
    %153 = tpu.matmul %152, %26, %cst_56 {dimension_numbers = #tpu.dot_dimension_numbers<[1], [0], [0], [1], [0, 0, 1, 1], [], []>} : vector<8x32xf32>, vector<32x128xf32>, vector<8x128xf32> -> vector<8x128xf32>
    %154 = vector.broadcast %19 : vector<1x128xf32> to vector<8x128xf32>
    %155 = arith.addf %153, %154 : vector<8x128xf32>
    %cst_57 = arith.constant 5.000000e-01 : f32
    %156 = vector.broadcast %cst_57 : f32 to vector<8x128xf32>
    %157 = arith.mulf %156, %155 : vector<8x128xf32>
    %cst_58 = arith.constant 4.471500e-02 : f32
    %158 = vector.broadcast %cst_58 : f32 to vector<8x128xf32>
    %159 = arith.mulf %158, %155 : vector<8x128xf32>
    %160 = arith.mulf %159, %155 : vector<8x128xf32>
    %161 = arith.mulf %160, %155 : vector<8x128xf32>
    %162 = arith.addf %155, %161 : vector<8x128xf32>
    %cst_59 = arith.constant 0.797884583 : f32
    %163 = vector.broadcast %cst_59 : f32 to vector<8x128xf32>
    %164 = arith.mulf %163, %162 : vector<8x128xf32>
    %165 = math.tanh %164 : vector<8x128xf32>
    %cst_60 = arith.constant 1.000000e+00 : f32
    %166 = vector.broadcast %cst_60 : f32 to vector<8x128xf32>
    %167 = arith.addf %166, %165 : vector<8x128xf32>
    %168 = arith.mulf %157, %167 : vector<8x128xf32>
    %cst_61 = arith.constant dense<0.000000e+00> : vector<8x32xf32>
    %169 = tpu.matmul %168, %28, %cst_61 {dimension_numbers = #tpu.dot_dimension_numbers<[1], [0], [0], [1], [0, 0, 1, 1], [], []>} : vector<8x128xf32>, vector<128x32xf32>, vector<8x32xf32> -> vector<8x32xf32>
    %170 = arith.addf %130, %169 : vector<8x32xf32>
    %171 = vector.broadcast %20 : vector<1x32xf32> to vector<8x32xf32>
    %172 = arith.addf %170, %171 : vector<8x32xf32>
    %c8 = arith.constant 8 : index
    %c0_62 = arith.constant 0 : index
    %173 = vector.load %arg4[%c8, %c0_62] : memref<26x128xf32, #tpu.memory_space<vmem>>, vector<1x32xf32>
    %c9 = arith.constant 9 : index
    %c0_63 = arith.constant 0 : index
    %174 = vector.load %arg4[%c9, %c0_63] : memref<26x128xf32, #tpu.memory_space<vmem>>, vector<1x32xf32>
    %c10 = arith.constant 10 : index
    %c0_64 = arith.constant 0 : index
    %175 = vector.load %arg4[%c10, %c0_64] : memref<26x128xf32, #tpu.memory_space<vmem>>, vector<1x32xf32>
    %c11 = arith.constant 11 : index
    %c0_65 = arith.constant 0 : index
    %176 = vector.load %arg4[%c11, %c0_65] : memref<26x128xf32, #tpu.memory_space<vmem>>, vector<1x32xf32>
    %c12 = arith.constant 12 : index
    %c0_66 = arith.constant 0 : index
    %177 = vector.load %arg4[%c12, %c0_66] : memref<26x128xf32, #tpu.memory_space<vmem>>, vector<1x96xf32>
    %c13 = arith.constant 13 : index
    %c0_67 = arith.constant 0 : index
    %178 = vector.load %arg4[%c13, %c0_67] : memref<26x128xf32, #tpu.memory_space<vmem>>, vector<1x32xf32>
    %c14 = arith.constant 14 : index
    %c0_68 = arith.constant 0 : index
    %179 = vector.load %arg4[%c14, %c0_68] : memref<26x128xf32, #tpu.memory_space<vmem>>, vector<1x128xf32>
    %c15 = arith.constant 15 : index
    %c0_69 = arith.constant 0 : index
    %180 = vector.load %arg4[%c15, %c0_69] : memref<26x128xf32, #tpu.memory_space<vmem>>, vector<1x32xf32>
    %c1_70 = arith.constant 1 : index
    %c0_71 = arith.constant 0 : index
    %c0_72 = arith.constant 0 : index
    %181 = vector.load %arg5[%c1_70, %c0_71, %c0_72] : memref<7x32x128xf32, #tpu.memory_space<vmem>>, vector<1x32x128xf32>
    %182 = vector.shape_cast %181 : vector<1x32x128xf32> to vector<32x128xf32>
    %183 = vector.extract_strided_slice %182 {offsets = [0, 0], sizes = [32, 96], strides = [1, 1]} : vector<32x128xf32> to vector<32x96xf32>
    %184 = vector.extract_strided_slice %182 {offsets = [0, 96], sizes = [32, 32], strides = [1, 1]} : vector<32x128xf32> to vector<32x32xf32>
    %c4_73 = arith.constant 4 : index
    %c0_74 = arith.constant 0 : index
    %c0_75 = arith.constant 0 : index
    %185 = vector.load %arg5[%c4_73, %c0_74, %c0_75] : memref<7x32x128xf32, #tpu.memory_space<vmem>>, vector<1x32x128xf32>
    %186 = vector.shape_cast %185 : vector<1x32x128xf32> to vector<32x128xf32>
    %c1_76 = arith.constant 1 : index
    %c0_77 = arith.constant 0 : index
    %c0_78 = arith.constant 0 : index
    %187 = vector.load %arg6[%c1_76, %c0_77, %c0_78] : memref<3x128x32xf32, #tpu.memory_space<vmem>>, vector<1x128x32xf32>
    %188 = vector.shape_cast %187 : vector<1x128x32xf32> to vector<128x32xf32>
    %cst_79 = arith.constant dense<0.000000e+00> : vector<8xf32>
    %189 = vector.multi_reduction <add>, %172, %cst_79 [1] : vector<8x32xf32> to vector<8xf32>
    %190 = vector.shape_cast %189 : vector<8xf32> to vector<8x1xf32>
    %cst_80 = arith.constant 3.200000e+01 : f32
    %191 = vector.broadcast %cst_80 : f32 to vector<8x1xf32>
    %192 = arith.divf %190, %191 : vector<8x1xf32>
    %193 = vector.broadcast %192 : vector<8x1xf32> to vector<8x32xf32>
    %194 = arith.subf %172, %193 : vector<8x32xf32>
    %195 = arith.mulf %194, %194 : vector<8x32xf32>
    %cst_81 = arith.constant dense<0.000000e+00> : vector<8xf32>
    %196 = vector.multi_reduction <add>, %195, %cst_81 [1] : vector<8x32xf32> to vector<8xf32>
    %197 = vector.shape_cast %196 : vector<8xf32> to vector<8x1xf32>
    %cst_82 = arith.constant 3.200000e+01 : f32
    %198 = vector.broadcast %cst_82 : f32 to vector<8x1xf32>
    %199 = arith.divf %197, %198 : vector<8x1xf32>
    %200 = vector.broadcast %192 : vector<8x1xf32> to vector<8x32xf32>
    %201 = arith.subf %172, %200 : vector<8x32xf32>
    %cst_83 = arith.constant 9.99999974E-6 : f32
    %202 = vector.broadcast %cst_83 : f32 to vector<8x1xf32>
    %203 = arith.addf %199, %202 : vector<8x1xf32>
    %204 = math.rsqrt %203 : vector<8x1xf32>
    %205 = vector.broadcast %204 : vector<8x1xf32> to vector<8x32xf32>
    %206 = arith.mulf %201, %205 : vector<8x32xf32>
    %207 = vector.broadcast %173 : vector<1x32xf32> to vector<8x32xf32>
    %208 = arith.mulf %206, %207 : vector<8x32xf32>
    %209 = vector.broadcast %174 : vector<1x32xf32> to vector<8x32xf32>
    %210 = arith.addf %208, %209 : vector<8x32xf32>
    %cst_84 = arith.constant dense<0.000000e+00> : vector<8x96xf32>
    %211 = tpu.matmul %210, %183, %cst_84 {dimension_numbers = #tpu.dot_dimension_numbers<[1], [0], [0], [1], [0, 0, 1, 1], [], []>} : vector<8x32xf32>, vector<32x96xf32>, vector<8x96xf32> -> vector<8x96xf32>
    %212 = vector.broadcast %177 : vector<1x96xf32> to vector<8x96xf32>
    %213 = arith.addf %211, %212 : vector<8x96xf32>
    %214 = vector.extract_strided_slice %213 {offsets = [0, 0], sizes = [8, 8], strides = [1, 1]} : vector<8x96xf32> to vector<8x8xf32>
    %215 = vector.extract_strided_slice %213 {offsets = [0, 32], sizes = [8, 8], strides = [1, 1]} : vector<8x96xf32> to vector<8x8xf32>
    %216 = vector.extract_strided_slice %213 {offsets = [0, 64], sizes = [8, 8], strides = [1, 1]} : vector<8x96xf32> to vector<8x8xf32>
    "tpu.trace_start"() <{level = 10 : i32, message = "qd,kd->qk"}> : () -> ()
    %cst_85 = arith.constant dense<0.000000e+00> : vector<8x8xf32>
    %217 = tpu.matmul %214, %215, %cst_85 {dimension_numbers = #tpu.dot_dimension_numbers<[1], [1], [0], [0], [0, 0, 1, 0], [], []>} : vector<8x8xf32>, vector<8x8xf32>, vector<8x8xf32> -> vector<8x8xf32>
    "tpu.trace_stop"() : () -> ()
    %cst_86 = arith.constant 0.353553385 : f32
    %218 = vector.broadcast %cst_86 : f32 to vector<8x8xf32>
    %219 = arith.mulf %217, %218 : vector<8x8xf32>
    %220 = arith.addf %219, %12 : vector<8x8xf32>
    %cst_87 = arith.constant dense<0xFF800000> : vector<8xf32>
    %221 = vector.multi_reduction <maximumf>, %220, %cst_87 [1] : vector<8x8xf32> to vector<8xf32>
    %222 = vector.shape_cast %221 : vector<8xf32> to vector<8x1xf32>
    %223 = vector.broadcast %222 : vector<8x1xf32> to vector<8x8xf32>
    %224 = arith.subf %220, %223 : vector<8x8xf32>
    %225 = math.exp %224 : vector<8x8xf32>
    %cst_88 = arith.constant dense<0.000000e+00> : vector<8xf32>
    %226 = vector.multi_reduction <add>, %225, %cst_88 [1] : vector<8x8xf32> to vector<8xf32>
    %227 = vector.shape_cast %226 : vector<8xf32> to vector<8x1xf32>
    %228 = tpu.reciprocal %227 {approx = true} : vector<8x1xf32> -> vector<8x1xf32>
    %229 = vector.broadcast %228 : vector<8x1xf32> to vector<8x8xf32>
    %230 = arith.mulf %225, %229 : vector<8x8xf32>
    %cst_89 = arith.constant dense<0.000000e+00> : vector<8x8xf32>
    %231 = tpu.matmul %230, %216, %cst_89 {dimension_numbers = #tpu.dot_dimension_numbers<[1], [0], [0], [1], [0, 0, 1, 1], [], []>} : vector<8x8xf32>, vector<8x8xf32>, vector<8x8xf32> -> vector<8x8xf32>
    %232 = vector.extract_strided_slice %213 {offsets = [0, 8], sizes = [8, 8], strides = [1, 1]} : vector<8x96xf32> to vector<8x8xf32>
    %233 = vector.extract_strided_slice %213 {offsets = [0, 40], sizes = [8, 8], strides = [1, 1]} : vector<8x96xf32> to vector<8x8xf32>
    %234 = vector.extract_strided_slice %213 {offsets = [0, 72], sizes = [8, 8], strides = [1, 1]} : vector<8x96xf32> to vector<8x8xf32>
    "tpu.trace_start"() <{level = 10 : i32, message = "qd,kd->qk"}> : () -> ()
    %cst_90 = arith.constant dense<0.000000e+00> : vector<8x8xf32>
    %235 = tpu.matmul %232, %233, %cst_90 {dimension_numbers = #tpu.dot_dimension_numbers<[1], [1], [0], [0], [0, 0, 1, 0], [], []>} : vector<8x8xf32>, vector<8x8xf32>, vector<8x8xf32> -> vector<8x8xf32>
    "tpu.trace_stop"() : () -> ()
    %cst_91 = arith.constant 0.353553385 : f32
    %236 = vector.broadcast %cst_91 : f32 to vector<8x8xf32>
    %237 = arith.mulf %235, %236 : vector<8x8xf32>
    %238 = arith.addf %237, %12 : vector<8x8xf32>
    %cst_92 = arith.constant dense<0xFF800000> : vector<8xf32>
    %239 = vector.multi_reduction <maximumf>, %238, %cst_92 [1] : vector<8x8xf32> to vector<8xf32>
    %240 = vector.shape_cast %239 : vector<8xf32> to vector<8x1xf32>
    %241 = vector.broadcast %240 : vector<8x1xf32> to vector<8x8xf32>
    %242 = arith.subf %238, %241 : vector<8x8xf32>
    %243 = math.exp %242 : vector<8x8xf32>
    %cst_93 = arith.constant dense<0.000000e+00> : vector<8xf32>
    %244 = vector.multi_reduction <add>, %243, %cst_93 [1] : vector<8x8xf32> to vector<8xf32>
    %245 = vector.shape_cast %244 : vector<8xf32> to vector<8x1xf32>
    %246 = tpu.reciprocal %245 {approx = true} : vector<8x1xf32> -> vector<8x1xf32>
    %247 = vector.broadcast %246 : vector<8x1xf32> to vector<8x8xf32>
    %248 = arith.mulf %243, %247 : vector<8x8xf32>
    %cst_94 = arith.constant dense<0.000000e+00> : vector<8x8xf32>
    %249 = tpu.matmul %248, %234, %cst_94 {dimension_numbers = #tpu.dot_dimension_numbers<[1], [0], [0], [1], [0, 0, 1, 1], [], []>} : vector<8x8xf32>, vector<8x8xf32>, vector<8x8xf32> -> vector<8x8xf32>
    %250 = vector.extract_strided_slice %213 {offsets = [0, 16], sizes = [8, 8], strides = [1, 1]} : vector<8x96xf32> to vector<8x8xf32>
    %251 = vector.extract_strided_slice %213 {offsets = [0, 48], sizes = [8, 8], strides = [1, 1]} : vector<8x96xf32> to vector<8x8xf32>
    %252 = vector.extract_strided_slice %213 {offsets = [0, 80], sizes = [8, 8], strides = [1, 1]} : vector<8x96xf32> to vector<8x8xf32>
    "tpu.trace_start"() <{level = 10 : i32, message = "qd,kd->qk"}> : () -> ()
    %cst_95 = arith.constant dense<0.000000e+00> : vector<8x8xf32>
    %253 = tpu.matmul %250, %251, %cst_95 {dimension_numbers = #tpu.dot_dimension_numbers<[1], [1], [0], [0], [0, 0, 1, 0], [], []>} : vector<8x8xf32>, vector<8x8xf32>, vector<8x8xf32> -> vector<8x8xf32>
    "tpu.trace_stop"() : () -> ()
    %cst_96 = arith.constant 0.353553385 : f32
    %254 = vector.broadcast %cst_96 : f32 to vector<8x8xf32>
    %255 = arith.mulf %253, %254 : vector<8x8xf32>
    %256 = arith.addf %255, %12 : vector<8x8xf32>
    %cst_97 = arith.constant dense<0xFF800000> : vector<8xf32>
    %257 = vector.multi_reduction <maximumf>, %256, %cst_97 [1] : vector<8x8xf32> to vector<8xf32>
    %258 = vector.shape_cast %257 : vector<8xf32> to vector<8x1xf32>
    %259 = vector.broadcast %258 : vector<8x1xf32> to vector<8x8xf32>
    %260 = arith.subf %256, %259 : vector<8x8xf32>
    %261 = math.exp %260 : vector<8x8xf32>
    %cst_98 = arith.constant dense<0.000000e+00> : vector<8xf32>
    %262 = vector.multi_reduction <add>, %261, %cst_98 [1] : vector<8x8xf32> to vector<8xf32>
    %263 = vector.shape_cast %262 : vector<8xf32> to vector<8x1xf32>
    %264 = tpu.reciprocal %263 {approx = true} : vector<8x1xf32> -> vector<8x1xf32>
    %265 = vector.broadcast %264 : vector<8x1xf32> to vector<8x8xf32>
    %266 = arith.mulf %261, %265 : vector<8x8xf32>
    %cst_99 = arith.constant dense<0.000000e+00> : vector<8x8xf32>
    %267 = tpu.matmul %266, %252, %cst_99 {dimension_numbers = #tpu.dot_dimension_numbers<[1], [0], [0], [1], [0, 0, 1, 1], [], []>} : vector<8x8xf32>, vector<8x8xf32>, vector<8x8xf32> -> vector<8x8xf32>
    %268 = vector.extract_strided_slice %213 {offsets = [0, 24], sizes = [8, 8], strides = [1, 1]} : vector<8x96xf32> to vector<8x8xf32>
    %269 = vector.extract_strided_slice %213 {offsets = [0, 56], sizes = [8, 8], strides = [1, 1]} : vector<8x96xf32> to vector<8x8xf32>
    %270 = vector.extract_strided_slice %213 {offsets = [0, 88], sizes = [8, 8], strides = [1, 1]} : vector<8x96xf32> to vector<8x8xf32>
    "tpu.trace_start"() <{level = 10 : i32, message = "qd,kd->qk"}> : () -> ()
    %cst_100 = arith.constant dense<0.000000e+00> : vector<8x8xf32>
    %271 = tpu.matmul %268, %269, %cst_100 {dimension_numbers = #tpu.dot_dimension_numbers<[1], [1], [0], [0], [0, 0, 1, 0], [], []>} : vector<8x8xf32>, vector<8x8xf32>, vector<8x8xf32> -> vector<8x8xf32>
    "tpu.trace_stop"() : () -> ()
    %cst_101 = arith.constant 0.353553385 : f32
    %272 = vector.broadcast %cst_101 : f32 to vector<8x8xf32>
    %273 = arith.mulf %271, %272 : vector<8x8xf32>
    %274 = arith.addf %273, %12 : vector<8x8xf32>
    %cst_102 = arith.constant dense<0xFF800000> : vector<8xf32>
    %275 = vector.multi_reduction <maximumf>, %274, %cst_102 [1] : vector<8x8xf32> to vector<8xf32>
    %276 = vector.shape_cast %275 : vector<8xf32> to vector<8x1xf32>
    %277 = vector.broadcast %276 : vector<8x1xf32> to vector<8x8xf32>
    %278 = arith.subf %274, %277 : vector<8x8xf32>
    %279 = math.exp %278 : vector<8x8xf32>
    %cst_103 = arith.constant dense<0.000000e+00> : vector<8xf32>
    %280 = vector.multi_reduction <add>, %279, %cst_103 [1] : vector<8x8xf32> to vector<8xf32>
    %281 = vector.shape_cast %280 : vector<8xf32> to vector<8x1xf32>
    %282 = tpu.reciprocal %281 {approx = true} : vector<8x1xf32> -> vector<8x1xf32>
    %283 = vector.broadcast %282 : vector<8x1xf32> to vector<8x8xf32>
    %284 = arith.mulf %279, %283 : vector<8x8xf32>
    %cst_104 = arith.constant dense<0.000000e+00> : vector<8x8xf32>
    %285 = tpu.matmul %284, %270, %cst_104 {dimension_numbers = #tpu.dot_dimension_numbers<[1], [0], [0], [1], [0, 0, 1, 1], [], []>} : vector<8x8xf32>, vector<8x8xf32>, vector<8x8xf32> -> vector<8x8xf32>
    %286 = tpu.concatenate %231, %249, %267, %285 in 1 : vector<8x8xf32>, vector<8x8xf32>, vector<8x8xf32>, vector<8x8xf32> -> vector<8x32xf32>
    %cst_105 = arith.constant dense<0.000000e+00> : vector<8x32xf32>
    %287 = tpu.matmul %286, %184, %cst_105 {dimension_numbers = #tpu.dot_dimension_numbers<[1], [0], [0], [1], [0, 0, 1, 1], [], []>} : vector<8x32xf32>, vector<32x32xf32>, vector<8x32xf32> -> vector<8x32xf32>
    %288 = arith.addf %172, %287 : vector<8x32xf32>
    %289 = vector.broadcast %178 : vector<1x32xf32> to vector<8x32xf32>
    %290 = arith.addf %288, %289 : vector<8x32xf32>
    %cst_106 = arith.constant dense<0.000000e+00> : vector<8xf32>
    %291 = vector.multi_reduction <add>, %290, %cst_106 [1] : vector<8x32xf32> to vector<8xf32>
    %292 = vector.shape_cast %291 : vector<8xf32> to vector<8x1xf32>
    %cst_107 = arith.constant 3.200000e+01 : f32
    %293 = vector.broadcast %cst_107 : f32 to vector<8x1xf32>
    %294 = arith.divf %292, %293 : vector<8x1xf32>
    %295 = vector.broadcast %294 : vector<8x1xf32> to vector<8x32xf32>
    %296 = arith.subf %290, %295 : vector<8x32xf32>
    %297 = arith.mulf %296, %296 : vector<8x32xf32>
    %cst_108 = arith.constant dense<0.000000e+00> : vector<8xf32>
    %298 = vector.multi_reduction <add>, %297, %cst_108 [1] : vector<8x32xf32> to vector<8xf32>
    %299 = vector.shape_cast %298 : vector<8xf32> to vector<8x1xf32>
    %cst_109 = arith.constant 3.200000e+01 : f32
    %300 = vector.broadcast %cst_109 : f32 to vector<8x1xf32>
    %301 = arith.divf %299, %300 : vector<8x1xf32>
    %302 = vector.broadcast %294 : vector<8x1xf32> to vector<8x32xf32>
    %303 = arith.subf %290, %302 : vector<8x32xf32>
    %cst_110 = arith.constant 9.99999974E-6 : f32
    %304 = vector.broadcast %cst_110 : f32 to vector<8x1xf32>
    %305 = arith.addf %301, %304 : vector<8x1xf32>
    %306 = math.rsqrt %305 : vector<8x1xf32>
    %307 = vector.broadcast %306 : vector<8x1xf32> to vector<8x32xf32>
    %308 = arith.mulf %303, %307 : vector<8x32xf32>
    %309 = vector.broadcast %175 : vector<1x32xf32> to vector<8x32xf32>
    %310 = arith.mulf %308, %309 : vector<8x32xf32>
    %311 = vector.broadcast %176 : vector<1x32xf32> to vector<8x32xf32>
    %312 = arith.addf %310, %311 : vector<8x32xf32>
    %cst_111 = arith.constant dense<0.000000e+00> : vector<8x128xf32>
    %313 = tpu.matmul %312, %186, %cst_111 {dimension_numbers = #tpu.dot_dimension_numbers<[1], [0], [0], [1], [0, 0, 1, 1], [], []>} : vector<8x32xf32>, vector<32x128xf32>, vector<8x128xf32> -> vector<8x128xf32>
    %314 = vector.broadcast %179 : vector<1x128xf32> to vector<8x128xf32>
    %315 = arith.addf %313, %314 : vector<8x128xf32>
    %cst_112 = arith.constant 5.000000e-01 : f32
    %316 = vector.broadcast %cst_112 : f32 to vector<8x128xf32>
    %317 = arith.mulf %316, %315 : vector<8x128xf32>
    %cst_113 = arith.constant 4.471500e-02 : f32
    %318 = vector.broadcast %cst_113 : f32 to vector<8x128xf32>
    %319 = arith.mulf %318, %315 : vector<8x128xf32>
    %320 = arith.mulf %319, %315 : vector<8x128xf32>
    %321 = arith.mulf %320, %315 : vector<8x128xf32>
    %322 = arith.addf %315, %321 : vector<8x128xf32>
    %cst_114 = arith.constant 0.797884583 : f32
    %323 = vector.broadcast %cst_114 : f32 to vector<8x128xf32>
    %324 = arith.mulf %323, %322 : vector<8x128xf32>
    %325 = math.tanh %324 : vector<8x128xf32>
    %cst_115 = arith.constant 1.000000e+00 : f32
    %326 = vector.broadcast %cst_115 : f32 to vector<8x128xf32>
    %327 = arith.addf %326, %325 : vector<8x128xf32>
    %328 = arith.mulf %317, %327 : vector<8x128xf32>
    %cst_116 = arith.constant dense<0.000000e+00> : vector<8x32xf32>
    %329 = tpu.matmul %328, %188, %cst_116 {dimension_numbers = #tpu.dot_dimension_numbers<[1], [0], [0], [1], [0, 0, 1, 1], [], []>} : vector<8x128xf32>, vector<128x32xf32>, vector<8x32xf32> -> vector<8x32xf32>
    %330 = arith.addf %290, %329 : vector<8x32xf32>
    %331 = vector.broadcast %180 : vector<1x32xf32> to vector<8x32xf32>
    %332 = arith.addf %330, %331 : vector<8x32xf32>
    %c16 = arith.constant 16 : index
    %c0_117 = arith.constant 0 : index
    %333 = vector.load %arg4[%c16, %c0_117] : memref<26x128xf32, #tpu.memory_space<vmem>>, vector<1x32xf32>
    %c17 = arith.constant 17 : index
    %c0_118 = arith.constant 0 : index
    %334 = vector.load %arg4[%c17, %c0_118] : memref<26x128xf32, #tpu.memory_space<vmem>>, vector<1x32xf32>
    %c18 = arith.constant 18 : index
    %c0_119 = arith.constant 0 : index
    %335 = vector.load %arg4[%c18, %c0_119] : memref<26x128xf32, #tpu.memory_space<vmem>>, vector<1x32xf32>
    %c19 = arith.constant 19 : index
    %c0_120 = arith.constant 0 : index
    %336 = vector.load %arg4[%c19, %c0_120] : memref<26x128xf32, #tpu.memory_space<vmem>>, vector<1x32xf32>
    %c20 = arith.constant 20 : index
    %c0_121 = arith.constant 0 : index
    %337 = vector.load %arg4[%c20, %c0_121] : memref<26x128xf32, #tpu.memory_space<vmem>>, vector<1x96xf32>
    %c21 = arith.constant 21 : index
    %c0_122 = arith.constant 0 : index
    %338 = vector.load %arg4[%c21, %c0_122] : memref<26x128xf32, #tpu.memory_space<vmem>>, vector<1x32xf32>
    %c22 = arith.constant 22 : index
    %c0_123 = arith.constant 0 : index
    %339 = vector.load %arg4[%c22, %c0_123] : memref<26x128xf32, #tpu.memory_space<vmem>>, vector<1x128xf32>
    %c23 = arith.constant 23 : index
    %c0_124 = arith.constant 0 : index
    %340 = vector.load %arg4[%c23, %c0_124] : memref<26x128xf32, #tpu.memory_space<vmem>>, vector<1x32xf32>
    %c2_125 = arith.constant 2 : index
    %c0_126 = arith.constant 0 : index
    %c0_127 = arith.constant 0 : index
    %341 = vector.load %arg5[%c2_125, %c0_126, %c0_127] : memref<7x32x128xf32, #tpu.memory_space<vmem>>, vector<1x32x128xf32>
    %342 = vector.shape_cast %341 : vector<1x32x128xf32> to vector<32x128xf32>
    %343 = vector.extract_strided_slice %342 {offsets = [0, 0], sizes = [32, 96], strides = [1, 1]} : vector<32x128xf32> to vector<32x96xf32>
    %344 = vector.extract_strided_slice %342 {offsets = [0, 96], sizes = [32, 32], strides = [1, 1]} : vector<32x128xf32> to vector<32x32xf32>
    %c5_128 = arith.constant 5 : index
    %c0_129 = arith.constant 0 : index
    %c0_130 = arith.constant 0 : index
    %345 = vector.load %arg5[%c5_128, %c0_129, %c0_130] : memref<7x32x128xf32, #tpu.memory_space<vmem>>, vector<1x32x128xf32>
    %346 = vector.shape_cast %345 : vector<1x32x128xf32> to vector<32x128xf32>
    %c2_131 = arith.constant 2 : index
    %c0_132 = arith.constant 0 : index
    %c0_133 = arith.constant 0 : index
    %347 = vector.load %arg6[%c2_131, %c0_132, %c0_133] : memref<3x128x32xf32, #tpu.memory_space<vmem>>, vector<1x128x32xf32>
    %348 = vector.shape_cast %347 : vector<1x128x32xf32> to vector<128x32xf32>
    %cst_134 = arith.constant dense<0.000000e+00> : vector<8xf32>
    %349 = vector.multi_reduction <add>, %332, %cst_134 [1] : vector<8x32xf32> to vector<8xf32>
    %350 = vector.shape_cast %349 : vector<8xf32> to vector<8x1xf32>
    %cst_135 = arith.constant 3.200000e+01 : f32
    %351 = vector.broadcast %cst_135 : f32 to vector<8x1xf32>
    %352 = arith.divf %350, %351 : vector<8x1xf32>
    %353 = vector.broadcast %352 : vector<8x1xf32> to vector<8x32xf32>
    %354 = arith.subf %332, %353 : vector<8x32xf32>
    %355 = arith.mulf %354, %354 : vector<8x32xf32>
    %cst_136 = arith.constant dense<0.000000e+00> : vector<8xf32>
    %356 = vector.multi_reduction <add>, %355, %cst_136 [1] : vector<8x32xf32> to vector<8xf32>
    %357 = vector.shape_cast %356 : vector<8xf32> to vector<8x1xf32>
    %cst_137 = arith.constant 3.200000e+01 : f32
    %358 = vector.broadcast %cst_137 : f32 to vector<8x1xf32>
    %359 = arith.divf %357, %358 : vector<8x1xf32>
    %360 = vector.broadcast %352 : vector<8x1xf32> to vector<8x32xf32>
    %361 = arith.subf %332, %360 : vector<8x32xf32>
    %cst_138 = arith.constant 9.99999974E-6 : f32
    %362 = vector.broadcast %cst_138 : f32 to vector<8x1xf32>
    %363 = arith.addf %359, %362 : vector<8x1xf32>
    %364 = math.rsqrt %363 : vector<8x1xf32>
    %365 = vector.broadcast %364 : vector<8x1xf32> to vector<8x32xf32>
    %366 = arith.mulf %361, %365 : vector<8x32xf32>
    %367 = vector.broadcast %333 : vector<1x32xf32> to vector<8x32xf32>
    %368 = arith.mulf %366, %367 : vector<8x32xf32>
    %369 = vector.broadcast %334 : vector<1x32xf32> to vector<8x32xf32>
    %370 = arith.addf %368, %369 : vector<8x32xf32>
    %cst_139 = arith.constant dense<0.000000e+00> : vector<8x96xf32>
    %371 = tpu.matmul %370, %343, %cst_139 {dimension_numbers = #tpu.dot_dimension_numbers<[1], [0], [0], [1], [0, 0, 1, 1], [], []>} : vector<8x32xf32>, vector<32x96xf32>, vector<8x96xf32> -> vector<8x96xf32>
    %372 = vector.broadcast %337 : vector<1x96xf32> to vector<8x96xf32>
    %373 = arith.addf %371, %372 : vector<8x96xf32>
    %374 = vector.extract_strided_slice %373 {offsets = [0, 0], sizes = [8, 8], strides = [1, 1]} : vector<8x96xf32> to vector<8x8xf32>
    %375 = vector.extract_strided_slice %373 {offsets = [0, 32], sizes = [8, 8], strides = [1, 1]} : vector<8x96xf32> to vector<8x8xf32>
    %376 = vector.extract_strided_slice %373 {offsets = [0, 64], sizes = [8, 8], strides = [1, 1]} : vector<8x96xf32> to vector<8x8xf32>
    "tpu.trace_start"() <{level = 10 : i32, message = "qd,kd->qk"}> : () -> ()
    %cst_140 = arith.constant dense<0.000000e+00> : vector<8x8xf32>
    %377 = tpu.matmul %374, %375, %cst_140 {dimension_numbers = #tpu.dot_dimension_numbers<[1], [1], [0], [0], [0, 0, 1, 0], [], []>} : vector<8x8xf32>, vector<8x8xf32>, vector<8x8xf32> -> vector<8x8xf32>
    "tpu.trace_stop"() : () -> ()
    %cst_141 = arith.constant 0.353553385 : f32
    %378 = vector.broadcast %cst_141 : f32 to vector<8x8xf32>
    %379 = arith.mulf %377, %378 : vector<8x8xf32>
    %380 = arith.addf %379, %12 : vector<8x8xf32>
    %cst_142 = arith.constant dense<0xFF800000> : vector<8xf32>
    %381 = vector.multi_reduction <maximumf>, %380, %cst_142 [1] : vector<8x8xf32> to vector<8xf32>
    %382 = vector.shape_cast %381 : vector<8xf32> to vector<8x1xf32>
    %383 = vector.broadcast %382 : vector<8x1xf32> to vector<8x8xf32>
    %384 = arith.subf %380, %383 : vector<8x8xf32>
    %385 = math.exp %384 : vector<8x8xf32>
    %cst_143 = arith.constant dense<0.000000e+00> : vector<8xf32>
    %386 = vector.multi_reduction <add>, %385, %cst_143 [1] : vector<8x8xf32> to vector<8xf32>
    %387 = vector.shape_cast %386 : vector<8xf32> to vector<8x1xf32>
    %388 = tpu.reciprocal %387 {approx = true} : vector<8x1xf32> -> vector<8x1xf32>
    %389 = vector.broadcast %388 : vector<8x1xf32> to vector<8x8xf32>
    %390 = arith.mulf %385, %389 : vector<8x8xf32>
    %cst_144 = arith.constant dense<0.000000e+00> : vector<8x8xf32>
    %391 = tpu.matmul %390, %376, %cst_144 {dimension_numbers = #tpu.dot_dimension_numbers<[1], [0], [0], [1], [0, 0, 1, 1], [], []>} : vector<8x8xf32>, vector<8x8xf32>, vector<8x8xf32> -> vector<8x8xf32>
    %392 = vector.extract_strided_slice %373 {offsets = [0, 8], sizes = [8, 8], strides = [1, 1]} : vector<8x96xf32> to vector<8x8xf32>
    %393 = vector.extract_strided_slice %373 {offsets = [0, 40], sizes = [8, 8], strides = [1, 1]} : vector<8x96xf32> to vector<8x8xf32>
    %394 = vector.extract_strided_slice %373 {offsets = [0, 72], sizes = [8, 8], strides = [1, 1]} : vector<8x96xf32> to vector<8x8xf32>
    "tpu.trace_start"() <{level = 10 : i32, message = "qd,kd->qk"}> : () -> ()
    %cst_145 = arith.constant dense<0.000000e+00> : vector<8x8xf32>
    %395 = tpu.matmul %392, %393, %cst_145 {dimension_numbers = #tpu.dot_dimension_numbers<[1], [1], [0], [0], [0, 0, 1, 0], [], []>} : vector<8x8xf32>, vector<8x8xf32>, vector<8x8xf32> -> vector<8x8xf32>
    "tpu.trace_stop"() : () -> ()
    %cst_146 = arith.constant 0.353553385 : f32
    %396 = vector.broadcast %cst_146 : f32 to vector<8x8xf32>
    %397 = arith.mulf %395, %396 : vector<8x8xf32>
    %398 = arith.addf %397, %12 : vector<8x8xf32>
    %cst_147 = arith.constant dense<0xFF800000> : vector<8xf32>
    %399 = vector.multi_reduction <maximumf>, %398, %cst_147 [1] : vector<8x8xf32> to vector<8xf32>
    %400 = vector.shape_cast %399 : vector<8xf32> to vector<8x1xf32>
    %401 = vector.broadcast %400 : vector<8x1xf32> to vector<8x8xf32>
    %402 = arith.subf %398, %401 : vector<8x8xf32>
    %403 = math.exp %402 : vector<8x8xf32>
    %cst_148 = arith.constant dense<0.000000e+00> : vector<8xf32>
    %404 = vector.multi_reduction <add>, %403, %cst_148 [1] : vector<8x8xf32> to vector<8xf32>
    %405 = vector.shape_cast %404 : vector<8xf32> to vector<8x1xf32>
    %406 = tpu.reciprocal %405 {approx = true} : vector<8x1xf32> -> vector<8x1xf32>
    %407 = vector.broadcast %406 : vector<8x1xf32> to vector<8x8xf32>
    %408 = arith.mulf %403, %407 : vector<8x8xf32>
    %cst_149 = arith.constant dense<0.000000e+00> : vector<8x8xf32>
    %409 = tpu.matmul %408, %394, %cst_149 {dimension_numbers = #tpu.dot_dimension_numbers<[1], [0], [0], [1], [0, 0, 1, 1], [], []>} : vector<8x8xf32>, vector<8x8xf32>, vector<8x8xf32> -> vector<8x8xf32>
    %410 = vector.extract_strided_slice %373 {offsets = [0, 16], sizes = [8, 8], strides = [1, 1]} : vector<8x96xf32> to vector<8x8xf32>
    %411 = vector.extract_strided_slice %373 {offsets = [0, 48], sizes = [8, 8], strides = [1, 1]} : vector<8x96xf32> to vector<8x8xf32>
    %412 = vector.extract_strided_slice %373 {offsets = [0, 80], sizes = [8, 8], strides = [1, 1]} : vector<8x96xf32> to vector<8x8xf32>
    "tpu.trace_start"() <{level = 10 : i32, message = "qd,kd->qk"}> : () -> ()
    %cst_150 = arith.constant dense<0.000000e+00> : vector<8x8xf32>
    %413 = tpu.matmul %410, %411, %cst_150 {dimension_numbers = #tpu.dot_dimension_numbers<[1], [1], [0], [0], [0, 0, 1, 0], [], []>} : vector<8x8xf32>, vector<8x8xf32>, vector<8x8xf32> -> vector<8x8xf32>
    "tpu.trace_stop"() : () -> ()
    %cst_151 = arith.constant 0.353553385 : f32
    %414 = vector.broadcast %cst_151 : f32 to vector<8x8xf32>
    %415 = arith.mulf %413, %414 : vector<8x8xf32>
    %416 = arith.addf %415, %12 : vector<8x8xf32>
    %cst_152 = arith.constant dense<0xFF800000> : vector<8xf32>
    %417 = vector.multi_reduction <maximumf>, %416, %cst_152 [1] : vector<8x8xf32> to vector<8xf32>
    %418 = vector.shape_cast %417 : vector<8xf32> to vector<8x1xf32>
    %419 = vector.broadcast %418 : vector<8x1xf32> to vector<8x8xf32>
    %420 = arith.subf %416, %419 : vector<8x8xf32>
    %421 = math.exp %420 : vector<8x8xf32>
    %cst_153 = arith.constant dense<0.000000e+00> : vector<8xf32>
    %422 = vector.multi_reduction <add>, %421, %cst_153 [1] : vector<8x8xf32> to vector<8xf32>
    %423 = vector.shape_cast %422 : vector<8xf32> to vector<8x1xf32>
    %424 = tpu.reciprocal %423 {approx = true} : vector<8x1xf32> -> vector<8x1xf32>
    %425 = vector.broadcast %424 : vector<8x1xf32> to vector<8x8xf32>
    %426 = arith.mulf %421, %425 : vector<8x8xf32>
    %cst_154 = arith.constant dense<0.000000e+00> : vector<8x8xf32>
    %427 = tpu.matmul %426, %412, %cst_154 {dimension_numbers = #tpu.dot_dimension_numbers<[1], [0], [0], [1], [0, 0, 1, 1], [], []>} : vector<8x8xf32>, vector<8x8xf32>, vector<8x8xf32> -> vector<8x8xf32>
    %428 = vector.extract_strided_slice %373 {offsets = [0, 24], sizes = [8, 8], strides = [1, 1]} : vector<8x96xf32> to vector<8x8xf32>
    %429 = vector.extract_strided_slice %373 {offsets = [0, 56], sizes = [8, 8], strides = [1, 1]} : vector<8x96xf32> to vector<8x8xf32>
    %430 = vector.extract_strided_slice %373 {offsets = [0, 88], sizes = [8, 8], strides = [1, 1]} : vector<8x96xf32> to vector<8x8xf32>
    "tpu.trace_start"() <{level = 10 : i32, message = "qd,kd->qk"}> : () -> ()
    %cst_155 = arith.constant dense<0.000000e+00> : vector<8x8xf32>
    %431 = tpu.matmul %428, %429, %cst_155 {dimension_numbers = #tpu.dot_dimension_numbers<[1], [1], [0], [0], [0, 0, 1, 0], [], []>} : vector<8x8xf32>, vector<8x8xf32>, vector<8x8xf32> -> vector<8x8xf32>
    "tpu.trace_stop"() : () -> ()
    %cst_156 = arith.constant 0.353553385 : f32
    %432 = vector.broadcast %cst_156 : f32 to vector<8x8xf32>
    %433 = arith.mulf %431, %432 : vector<8x8xf32>
    %434 = arith.addf %433, %12 : vector<8x8xf32>
    %cst_157 = arith.constant dense<0xFF800000> : vector<8xf32>
    %435 = vector.multi_reduction <maximumf>, %434, %cst_157 [1] : vector<8x8xf32> to vector<8xf32>
    %436 = vector.shape_cast %435 : vector<8xf32> to vector<8x1xf32>
    %437 = vector.broadcast %436 : vector<8x1xf32> to vector<8x8xf32>
    %438 = arith.subf %434, %437 : vector<8x8xf32>
    %439 = math.exp %438 : vector<8x8xf32>
    %cst_158 = arith.constant dense<0.000000e+00> : vector<8xf32>
    %440 = vector.multi_reduction <add>, %439, %cst_158 [1] : vector<8x8xf32> to vector<8xf32>
    %441 = vector.shape_cast %440 : vector<8xf32> to vector<8x1xf32>
    %442 = tpu.reciprocal %441 {approx = true} : vector<8x1xf32> -> vector<8x1xf32>
    %443 = vector.broadcast %442 : vector<8x1xf32> to vector<8x8xf32>
    %444 = arith.mulf %439, %443 : vector<8x8xf32>
    %cst_159 = arith.constant dense<0.000000e+00> : vector<8x8xf32>
    %445 = tpu.matmul %444, %430, %cst_159 {dimension_numbers = #tpu.dot_dimension_numbers<[1], [0], [0], [1], [0, 0, 1, 1], [], []>} : vector<8x8xf32>, vector<8x8xf32>, vector<8x8xf32> -> vector<8x8xf32>
    %446 = tpu.concatenate %391, %409, %427, %445 in 1 : vector<8x8xf32>, vector<8x8xf32>, vector<8x8xf32>, vector<8x8xf32> -> vector<8x32xf32>
    %cst_160 = arith.constant dense<0.000000e+00> : vector<8x32xf32>
    %447 = tpu.matmul %446, %344, %cst_160 {dimension_numbers = #tpu.dot_dimension_numbers<[1], [0], [0], [1], [0, 0, 1, 1], [], []>} : vector<8x32xf32>, vector<32x32xf32>, vector<8x32xf32> -> vector<8x32xf32>
    %448 = arith.addf %332, %447 : vector<8x32xf32>
    %449 = vector.broadcast %338 : vector<1x32xf32> to vector<8x32xf32>
    %450 = arith.addf %448, %449 : vector<8x32xf32>
    %cst_161 = arith.constant dense<0.000000e+00> : vector<8xf32>
    %451 = vector.multi_reduction <add>, %450, %cst_161 [1] : vector<8x32xf32> to vector<8xf32>
    %452 = vector.shape_cast %451 : vector<8xf32> to vector<8x1xf32>
    %cst_162 = arith.constant 3.200000e+01 : f32
    %453 = vector.broadcast %cst_162 : f32 to vector<8x1xf32>
    %454 = arith.divf %452, %453 : vector<8x1xf32>
    %455 = vector.broadcast %454 : vector<8x1xf32> to vector<8x32xf32>
    %456 = arith.subf %450, %455 : vector<8x32xf32>
    %457 = arith.mulf %456, %456 : vector<8x32xf32>
    %cst_163 = arith.constant dense<0.000000e+00> : vector<8xf32>
    %458 = vector.multi_reduction <add>, %457, %cst_163 [1] : vector<8x32xf32> to vector<8xf32>
    %459 = vector.shape_cast %458 : vector<8xf32> to vector<8x1xf32>
    %cst_164 = arith.constant 3.200000e+01 : f32
    %460 = vector.broadcast %cst_164 : f32 to vector<8x1xf32>
    %461 = arith.divf %459, %460 : vector<8x1xf32>
    %462 = vector.broadcast %454 : vector<8x1xf32> to vector<8x32xf32>
    %463 = arith.subf %450, %462 : vector<8x32xf32>
    %cst_165 = arith.constant 9.99999974E-6 : f32
    %464 = vector.broadcast %cst_165 : f32 to vector<8x1xf32>
    %465 = arith.addf %461, %464 : vector<8x1xf32>
    %466 = math.rsqrt %465 : vector<8x1xf32>
    %467 = vector.broadcast %466 : vector<8x1xf32> to vector<8x32xf32>
    %468 = arith.mulf %463, %467 : vector<8x32xf32>
    %469 = vector.broadcast %335 : vector<1x32xf32> to vector<8x32xf32>
    %470 = arith.mulf %468, %469 : vector<8x32xf32>
    %471 = vector.broadcast %336 : vector<1x32xf32> to vector<8x32xf32>
    %472 = arith.addf %470, %471 : vector<8x32xf32>
    %cst_166 = arith.constant dense<0.000000e+00> : vector<8x128xf32>
    %473 = tpu.matmul %472, %346, %cst_166 {dimension_numbers = #tpu.dot_dimension_numbers<[1], [0], [0], [1], [0, 0, 1, 1], [], []>} : vector<8x32xf32>, vector<32x128xf32>, vector<8x128xf32> -> vector<8x128xf32>
    %474 = vector.broadcast %339 : vector<1x128xf32> to vector<8x128xf32>
    %475 = arith.addf %473, %474 : vector<8x128xf32>
    %cst_167 = arith.constant 5.000000e-01 : f32
    %476 = vector.broadcast %cst_167 : f32 to vector<8x128xf32>
    %477 = arith.mulf %476, %475 : vector<8x128xf32>
    %cst_168 = arith.constant 4.471500e-02 : f32
    %478 = vector.broadcast %cst_168 : f32 to vector<8x128xf32>
    %479 = arith.mulf %478, %475 : vector<8x128xf32>
    %480 = arith.mulf %479, %475 : vector<8x128xf32>
    %481 = arith.mulf %480, %475 : vector<8x128xf32>
    %482 = arith.addf %475, %481 : vector<8x128xf32>
    %cst_169 = arith.constant 0.797884583 : f32
    %483 = vector.broadcast %cst_169 : f32 to vector<8x128xf32>
    %484 = arith.mulf %483, %482 : vector<8x128xf32>
    %485 = math.tanh %484 : vector<8x128xf32>
    %cst_170 = arith.constant 1.000000e+00 : f32
    %486 = vector.broadcast %cst_170 : f32 to vector<8x128xf32>
    %487 = arith.addf %486, %485 : vector<8x128xf32>
    %488 = arith.mulf %477, %487 : vector<8x128xf32>
    %cst_171 = arith.constant dense<0.000000e+00> : vector<8x32xf32>
    %489 = tpu.matmul %488, %348, %cst_171 {dimension_numbers = #tpu.dot_dimension_numbers<[1], [0], [0], [1], [0, 0, 1, 1], [], []>} : vector<8x128xf32>, vector<128x32xf32>, vector<8x32xf32> -> vector<8x32xf32>
    %490 = arith.addf %450, %489 : vector<8x32xf32>
    %491 = vector.broadcast %340 : vector<1x32xf32> to vector<8x32xf32>
    %492 = arith.addf %490, %491 : vector<8x32xf32>
    %c24 = arith.constant 24 : index
    %c0_172 = arith.constant 0 : index
    %493 = vector.load %arg4[%c24, %c0_172] : memref<26x128xf32, #tpu.memory_space<vmem>>, vector<1x32xf32>
    %c25 = arith.constant 25 : index
    %c0_173 = arith.constant 0 : index
    %494 = vector.load %arg4[%c25, %c0_173] : memref<26x128xf32, #tpu.memory_space<vmem>>, vector<1x32xf32>
    %cst_174 = arith.constant dense<0.000000e+00> : vector<8xf32>
    %495 = vector.multi_reduction <add>, %492, %cst_174 [1] : vector<8x32xf32> to vector<8xf32>
    %496 = vector.shape_cast %495 : vector<8xf32> to vector<8x1xf32>
    %cst_175 = arith.constant 3.200000e+01 : f32
    %497 = vector.broadcast %cst_175 : f32 to vector<8x1xf32>
    %498 = arith.divf %496, %497 : vector<8x1xf32>
    %499 = vector.broadcast %498 : vector<8x1xf32> to vector<8x32xf32>
    %500 = arith.subf %492, %499 : vector<8x32xf32>
    %501 = arith.mulf %500, %500 : vector<8x32xf32>
    %cst_176 = arith.constant dense<0.000000e+00> : vector<8xf32>
    %502 = vector.multi_reduction <add>, %501, %cst_176 [1] : vector<8x32xf32> to vector<8xf32>
    %503 = vector.shape_cast %502 : vector<8xf32> to vector<8x1xf32>
    %cst_177 = arith.constant 3.200000e+01 : f32
    %504 = vector.broadcast %cst_177 : f32 to vector<8x1xf32>
    %505 = arith.divf %503, %504 : vector<8x1xf32>
    %506 = vector.broadcast %498 : vector<8x1xf32> to vector<8x32xf32>
    %507 = arith.subf %492, %506 : vector<8x32xf32>
    %cst_178 = arith.constant 9.99999974E-6 : f32
    %508 = vector.broadcast %cst_178 : f32 to vector<8x1xf32>
    %509 = arith.addf %505, %508 : vector<8x1xf32>
    %510 = math.rsqrt %509 : vector<8x1xf32>
    %511 = vector.broadcast %510 : vector<8x1xf32> to vector<8x32xf32>
    %512 = arith.mulf %507, %511 : vector<8x32xf32>
    %513 = vector.broadcast %493 : vector<1x32xf32> to vector<8x32xf32>
    %514 = arith.mulf %512, %513 : vector<8x32xf32>
    %515 = vector.broadcast %494 : vector<1x32xf32> to vector<8x32xf32>
    %516 = arith.addf %514, %515 : vector<8x32xf32>
    %c6_179 = arith.constant 6 : index
    %c0_180 = arith.constant 0 : index
    %c0_181 = arith.constant 0 : index
    %517 = vector.load %arg5[%c6_179, %c0_180, %c0_181] : memref<7x32x128xf32, #tpu.memory_space<vmem>>, vector<1x32x128xf32>
    %518 = vector.shape_cast %517 : vector<1x32x128xf32> to vector<32x128xf32>
    %cst_182 = arith.constant dense<0.000000e+00> : vector<8x128xf32>
    %519 = tpu.matmul %516, %518, %cst_182 {dimension_numbers = #tpu.dot_dimension_numbers<[1], [0], [0], [1], [0, 0, 1, 1], [], []>} : vector<8x32xf32>, vector<32x128xf32>, vector<8x128xf32> -> vector<8x128xf32>
    %c0_183 = arith.constant 0 : index
    %c0_184 = arith.constant 0 : index
    %520 = vector.load %arg3[%c0_183, %c0_184] : memref<8x128xf32, #tpu.memory_space<vmem>>, vector<8x128xf32>
    %521 = tpu.iota {dimensions = array<i32: 1>} : vector<8x128xi32>
    %c64_i32 = arith.constant 64 : i32
    %522 = vector.broadcast %c64_i32 : i32 to vector<8x128xi32>
    %523 = arith.cmpi slt, %521, %522 : vector<8x128xi32>
    %524 = arith.extui %523 : vector<8x128xi1> to vector<8x128xi32>
    %525 = arith.sitofp %524 : vector<8x128xi32> to vector<8x128xf32>
    %cst_185 = arith.constant 0.000000e+00 : f32
    %526 = vector.broadcast %cst_185 : f32 to vector<8x128xf32>
    %527 = arith.maximumf %519, %526 : vector<8x128xf32>
    %528 = arith.mulf %519, %520 : vector<8x128xf32>
    %529 = arith.subf %527, %528 : vector<8x128xf32>
    %530 = math.absf %519 : vector<8x128xf32>
    %cst_186 = arith.constant 0.000000e+00 : f32
    %531 = vector.broadcast %cst_186 : f32 to vector<8x128xf32>
    %532 = arith.subf %531, %530 : vector<8x128xf32>
    %533 = math.exp %532 : vector<8x128xf32>
    %534 = math.log1p %533 : vector<8x128xf32>
    %535 = arith.addf %529, %534 : vector<8x128xf32>
    %536 = arith.mulf %535, %525 : vector<8x128xf32>
    %cst_187 = arith.constant dense<0.000000e+00> : vector<8xf32>
    %537 = vector.multi_reduction <add>, %536, %cst_187 [1] : vector<8x128xf32> to vector<8xf32>
    %538 = vector.shape_cast %537 : vector<8xf32> to vector<8x1xf32>
    %c64_i32_188 = arith.constant 64 : i32
    %539 = vector.broadcast %c64_i32_188 : i32 to vector<8x128xi32>
    %540 = arith.cmpi eq, %521, %539 : vector<8x128xi32>
    %541 = arith.extui %540 : vector<8x128xi1> to vector<8x128xi32>
    %542 = arith.sitofp %541 : vector<8x128xi32> to vector<8x128xf32>
    %543 = vector.broadcast %538 : vector<8x1xf32> to vector<8x128xf32>
    %544 = arith.mulf %543, %542 : vector<8x128xf32>
    %545 = arith.addf %519, %544 : vector<8x128xf32>
    %c0_189 = arith.constant 0 : index
    %c0_190 = arith.constant 0 : index
    %546 = vector.load %arg7[%c0_189, %c0_190] : memref<8x128xf32, #tpu.memory_space<vmem>>, vector<8x128xf32>
    tpu.vector_store %arg7[%c0_189, %c0_190], %545 {strides = array<i32>} : memref<8x128xf32, #tpu.memory_space<vmem>>, vector<8x128xf32>,
    return
  }
  func.func @transform_0(%arg0: i32) -> (i32, i32) {
    %c0_i32 = arith.constant 0 : i32
    %c0_i32_0 = arith.constant 0 : i32
    return %arg0, %c0_i32 : i32, i32
  }
  func.func @transform_1(%arg0: i32) -> (i32, i32, i32) {
    %c0_i32 = arith.constant 0 : i32
    %c0_i32_0 = arith.constant 0 : i32
    %c0_i32_1 = arith.constant 0 : i32
    return %arg0, %c0_i32, %c0_i32_0 : i32, i32, i32
  }
  func.func @transform_2(%arg0: i32) -> (i32, i32) {
    %c0_i32 = arith.constant 0 : i32
    %c0_i32_0 = arith.constant 0 : i32
    return %arg0, %c0_i32 : i32, i32
  }
  func.func @transform_3(%arg0: i32) -> (i32, i32) {
    %c0_i32 = arith.constant 0 : i32
    %c0_i32_0 = arith.constant 0 : i32
    %c0_i32_1 = arith.constant 0 : i32
    return %c0_i32, %c0_i32_0 : i32, i32
  }
  func.func @transform_4(%arg0: i32) -> (i32, i32, i32) {
    %c0_i32 = arith.constant 0 : i32
    %c0_i32_0 = arith.constant 0 : i32
    %c0_i32_1 = arith.constant 0 : i32
    %c0_i32_2 = arith.constant 0 : i32
    return %c0_i32, %c0_i32_0, %c0_i32_1 : i32, i32, i32
  }
  func.func @transform_5(%arg0: i32) -> (i32, i32, i32) {
    %c0_i32 = arith.constant 0 : i32
    %c0_i32_0 = arith.constant 0 : i32
    %c0_i32_1 = arith.constant 0 : i32
    %c0_i32_2 = arith.constant 0 : i32
    return %c0_i32, %c0_i32_0, %c0_i32_1 : i32, i32, i32
  }
  func.func @transform_6(%arg0: i32) -> (i32, i32) {
    %c0_i32 = arith.constant 0 : i32
    %c0_i32_0 = arith.constant 0 : i32
    return %arg0, %c0_i32 : i32, i32
  }
}

</mosaic_0001>

<bundles_post_ra>
// kernel: tfree_forward.1
= control target key start
LH: loop header
LB: loop body
LE: loop exit
PB: predicated region body
PF: predicated region fallthrough
CT: control target
= control target key end

     0   :  { %s4580_s21 = smov 0   ;;  %s5401_s0 = inlined_call_operand.vmem [shape: f32[16,32], index: 0, kind: input, shape index: {}]   ;;  %s5402_s1 = inlined_call_operand.vmem [shape: f32[2,1,8], index: 1, kind: input, shape index: {}]   ;;  %s5403_s2 = inlined_call_operand.vmem [shape: f32[16,128], index: 2, kind: input, shape index: {}]   ;;  %s5404_s3 = inlined_call_operand.vmem [shape: f32[26,128], index: 3, kind: input, shape index: {}]   ;;  %s5405_s4 = inlined_call_operand.vmem [shape: f32[7,32,128], index: 4, kind: input, shape index: {}]   ;;  %s5406_s5 = inlined_call_operand.vmem [shape: f32[3,128,32], index: 5, kind: input, shape index: {}]   ;;  %s5407_s6 = inlined_call_operand.vmem [shape: f32[16,128], index: 6, kind: output, shape index: {}]  }
   0x1 LB: > { %s3795_s22 = sadd.s32 4294967295, %s4524_s21   ;;  %p3799_p0 = scmp.ge.s32.totalorder %s4524_s21, 1  ;;  %s4524_s21 = sphi %s4580_s21, %s16_s21  }
   0x2   : > { %p228_p1 = scmp.lt.s32.totalorder %s4524_s21, 3 }
   0x4   : > { %p229_p2 = pnand %p3799_p0, %p228_p1 }
   0x5   : > { %p263_p3 = scmp.lt.s32.totalorder (!%p229_p2), %s3795_s22, 1  ;;  %s4528_s17 = smov (!%p229_p2), 64  }
   0x6   : > { %232 = sbr.rel (%p229_p2) target bundleno = 10375 (0x2887), region = 44  ;;  %s4529_s18 = smov (!%p229_p2), 96  }
   0x7   : > { %s4530_s19 = smov (!%p229_p2), 88   ;;  %s4535_s27 = smov (!%p229_p2), 112  }
   0x8   : > { %s4536_s28 = smov (!%p229_p2), 72   ;;  %s4537_s29 = smov (!%p229_p2), 104  }
   0x9   : > { %s4538_s30 = smov (!%p229_p2), 48   ;;  %s4539_s7 = smov (!%p229_p2), 56  }
   0xa   : > { %s4540_s8 = smov (!%p229_p2), 40   ;;  %s4541_s9 = smov (!%p229_p2), 32  }
   0xb   : > { %s5414_s22 = smov (!%p263_p3, %s3795_s22), 1  ;;  %vm327_vm0 = vcmask 261120   ;;  %v4606_v7 = vld [vmem:[%s5405_s4 + $0x18] sm:$0xff]  ;;  %v4526_v8 = vmov 0.0   ;;  %v4612_v9 = vld [vmem:[%s5405_s4 + $0x10] sm:$0xff]  ;;  %vm4527_vm1 = vmmov 0   ;;  %v279_v27 = vlaneseq }
   0xc   : > { %s4591_s23 = sshll.u32 %s5414_s22, 3  ;;  %4084 = vmatprep.subr.mxu1 %v4526_v8  ;;  %4092 = vmatprep.mubr.msk.f32.mxu1 %vm4527_vm1, %v4526_v8  ;;  %v4622_v10 = vld [vmem:[%s5405_s4 + $0x8] sm:$0xff]  ;;  %v4631_v11 = vld [vmem:[%s5405_s4] sm:$0xff]  ;;  %vm432_vm2 = vcmask 64512   ;;  %s269_s25 = scalar_lea.vmem %s5402_s1, %s5414_s22  ;;  %v4531_v31 = vmov 0   ;;  %vm1110_vm7 = vcmask 130048  }
   0xd   : > { %s266_s26 = scalar_lea.vmem %s5401_s0, %s4591_s23  ;;  %4085 = vmatpush3.msra.mxu1 %v4606_v7  ;;  %4115 = vmatprep.subr.mxu0 %v4526_v8  ;;  %v3807_v16 = vld [vmem:[%s5404_s3] ss:$0 sm:$0xff]  ;;  %v3808_v18 = vld [vmem:[%s5404_s3 + $0x1] ss:$0 sm:$0xff]  ;;  %v3809_v21 = vld [vmem:[%s5404_s3 + $0x4] ss:$0 sm:$0xff] }
   0xe   : > { %v4597_v0 = vld [vmem:[%s266_s26] sm:$0xff]  ;;  %4086 = vmatprep.subr.mxu1 %v4526_v8  ;;  %4117 = vmatprep.mubr.msk.f32.mxu0 %vm4527_vm1, %v4526_v8  ;;  %v280_v29 = vshrl.u32 %v279_v27, 7  ;;  %v4668_v33 = vand.u32 127, %v279_v27  ;;  %v4532_v35 = vmov -1e+09   ;;  %s4533_s22 = smov 80  }
   0xf   : > { %v328_v1 = vsel %vm327_vm0, %v4597_v0, 0.0  ;;  %4087 = vmatpush3.msra.mxu1 %v4612_v9  ;;  %v283_v28 = vld [vmem:[%s269_s25] sm:$0x1]  ;;  %s4534_s26 = smov 120   ;;  %s4542_s10 = smov 8   ;;  %vm1112_vm8 = vcmask 195584  }
  0x10   : > { %329 = vadd.xlane.f32.xlu0 %v328_v1  ;;  %4088 = vmatprep.subr.mxu1 %v4526_v8  ;;  %vm284_vm3 = vcmp.gt.f32.partialorder %v283_v28, 0.5  ;;  %v289_v30 = vsub.s32 0, %v280_v29  ;;  %vm285_vm4 = vcmp.le.s32.totalorder %v4668_v33, %v280_v29  ;;  %s5410_s11 = smov 16   ;;  %s5408_s12 = smov 24   ;;  %vm3692_vm9 = vcmp.lt.s32.totalorder %v4668_v33, 64 }
  0x11   : > { %4089 = vmatpush3.msra.mxu1 %v4622_v10  ;;  %v286_v32 = vsel %vm284_vm3, 1, %v4531_v31  ;;  %s5411_s13 = smov 24   ;;  %s273_s25 = scalar_lea.vmem %s5403_s2, %s4591_s23  ;;  %vm3715_vm11 = vcmp.eq.s32.totalorder %v4668_v33, 64 }
  0x12   : > { %4090 = vmatprep.subr.mxu1 %v4526_v8  ;;  %v290_v34 = vrot.slane %v286_v32, %v289_v30 }
  0x13   : > { %4091 = vmatpush3.msra.mxu1 %v4631_v11 }
  0x14   : > { %4095 = vmatprep.subr.mxu1 %v4526_v8  ;;  %vm291_vm5 = vcmp.eq.s32.totalorder %v290_v34, 1 }
  0x15   : > { %vm292_vm6 = vmand %vm285_vm4, %vm291_vm5 }
  0x16   : > { %v4671_v36 = vsel %vm292_vm6, 0.0, %v4532_v35 }
  0x99   : > { %v330_v2 = vpop.xlane.xlu0 %329 }
  0x9a   : > { %v332_v3 = vmul.f32 0.03125, %v330_v2 }
  0x9c   : > { %v333_v4 = vsub.f32 %v4597_v0, %v332_v3 }
  0x9e   : > { %v334_v5 = vmul.f32 %v333_v4, %v333_v4 }
  0xa0   : > { %v335_v6 = vsel %vm327_vm0, %v334_v5, 0.0 }
  0xa1   : > { %336 = vadd.xlane.f32.xlu0 %v335_v6 }
 0x12a   : > { %v337_v12 = vpop.xlane.xlu0 %336 }
 0x12b   : > { %v338_v13 = vmul.f32 0.03125, %v337_v12 }
 0x12d   : > { %v339_v14 = vadd.f32 1e-05, %v338_v13 }
 0x12f   : > { %4446 = vrsqrt.f32 %v339_v14 }
 0x13c   : > { %v4447_v15 = vpop.eup %4446 }
 0x13d   : > { %v341_v17 = vmul.f32 %v4447_v15, %v333_v4 }
 0x13f   : > { %v346_v19 = vmul.f32 %v3807_v16, %v341_v17 }
 0x141   : > { %v351_v20 = vadd.f32 %v3808_v18, %v346_v19 }
 0x143   : > { %4093 = vmatmul.mubr.msk.f32.vlgmr.msra.gmra.mxu1 %vm327_vm0, %v351_v20 }
 0x144   : > { %4097 = vmatprep.mubr.msk.f32.mxu1 %vm4527_vm1, %v4526_v8 }
 0x203   : > { %v425_v22 = vpop.f32.mrf.mxu1 }
 0x204   : > { %v4649_v23 = vadd.f32 %v3809_v21, %v425_v22 }
 0x205   : > { %v4094_v24 = vpop.f32.mrf.mxu1 }
 0x206   : > { %520 = vrot.lane.b32.xlu0 %v4649_v23, %s4528_s17  ;;  %430 = vrot.lane.b32.xlu1 %v4649_v23, %s4529_s18 }
 0x20a   : > { %598 = vrot.lane.b32.xlu0 %v4649_v23, %s4530_s19 }
 0x278   : > { %v431_v25 = vpop.permute.xlu1 %430  ;;  %v521_v26 = vpop.permute.xlu0 %520 }
 0x279   : > { %4096 = vmatpush3.xpose.msk.msra.mxu1 %vm432_vm2, %v431_v25 }
 0x27a   : > { %4100 = vmatprep.subr.mxu1 %v4526_v8 }
 0x27c   : > { %4098 = vmatmul.mubr.msk.f32.vlgmr.msra.gmra.mxu1 %vm432_vm2, %v4649_v23  ;;  %v599_v48 = vpop.permute.xlu0 %598 }
 0x27d   : > { %4101 = vmatpush3.msra.mxu1 %v521_v26  ;;  %4102 = vmatprep.mubr.msk.f32.mxu1 %vm4527_vm1, %v4526_v8 }
 0x27e   : > { %4105 = vmatprep.subr.mxu1 %v4526_v8 }
 0x33c   : > { %v503_v37 = vpop.f32.mrf.mxu1 }
 0x33d   : > { %v507_v38 = vmul.f32 0.35355338, %v503_v37 }
 0x33e   : > { %v4099_v39 = vpop.f32.mrf.mxu1 }
 0x33f   : > { %v508_v40 = vadd.f32 %v507_v38, %v4671_v36 }
 0x341   : > { %v509_v41 = vsel %vm432_vm2, %v508_v40, -inf }
 0x342   : > { %510 = vmax.xlane.f32.xlu1 %v509_v41 }
 0x353   : > { %765 = vrot.lane.b32.xlu1 %v4649_v23, %s4533_s22 }
 0x3cb   : > { %v511_v42 = vpop.xlane.xlu1 %510 }
 0x3cc   : > { %v512_v43 = vsub.f32 %v508_v40, %v511_v42 }
 0x3ce   : > { %v513_v44 = vmul.f32 1.442695, %v512_v43 }
 0x3cf   : > { %v766_v45 = vpop.permute.xlu1 %765 }
 0x3d0   : > { %4448 = vpow2.f32 %v513_v44  ;;  %4116 = vmatpush3.xpose.msk.msra.mxu0 %vm432_vm2, %v766_v45 }
 0x3d1   : > { %4125 = vmatprep.subr.mxu0 %v4526_v8 }
 0x3dd   : > { %v4449_v46 = vpop.eup %4448 }
 0x3de   : > { %v515_v47 = vsel %vm432_vm2, %v4449_v46, 0.0 }
 0x3df   : > { %516 = vadd.xlane.f32.xlu0 %v515_v47 }
 0x3f5   : > { %596 = vrot.lane.b32.xlu0 %v4649_v23, %s4534_s26 }
 0x3f9   : > { %763 = vrot.lane.b32.xlu0 %v4649_v23, %s4535_s27 }
 0x3fd   : > { %932 = vrot.lane.b32.xlu0 %v4649_v23, %s4536_s28 }
 0x401   : > { %930 = vrot.lane.b32.xlu0 %v4649_v23, %s4537_s29 }
 0x468   : > { %v517_v49 = vpop.xlane.xlu0 %516 }
 0x469   : > { %4450 = vrcp.f32 %v517_v49 }
 0x46c   : > { %v597_v50 = vpop.permute.xlu0 %596 }
 0x470   : > { %v764_v51 = vpop.permute.xlu0 %763 }
 0x471   : > { %4118 = vmatmul.mubr.msk.f32.vlgmr.msra.gmra.mxu0 %vm432_vm2, %v764_v51 }
 0x472   : > { %4127 = vmatprep.mubr.msk.f32.mxu0 %vm4527_vm1, %v4526_v8 }
 0x474   : > { %v933_v52 = vpop.permute.xlu0 %932 }
 0x475   : > { %4126 = vmatpush3.xpose.msk.msra.mxu0 %vm432_vm2, %v933_v52 }
 0x476   : > { %v4451_v53 = vpop.eup %4450  ;;  %4135 = vmatprep.subr.mxu0 %v4526_v8 }
 0x477   : > { %v519_v54 = vmul.f32 %v4451_v53, %v4449_v46 }
 0x478   : > { %v931_v55 = vpop.permute.xlu0 %930 }
 0x479   : > { %4103 = vmatmul.mubr.msk.f32.vlgmr.msra.gmra.mxu1 %vm432_vm2, %v519_v54  ;;  %4128 = vmatmul.mubr.msk.f32.vlgmr.msra.gmra.mxu0 %vm432_vm2, %v931_v55 }
 0x47a   : > { %4106 = vmatpush3.xpose.msk.msra.mxu1 %vm432_vm2, %v599_v48  ;;  %4107 = vmatprep.mubr.msk.f32.mxu1 %vm4527_vm1, %v4526_v8 }
 0x47b   : > { %4110 = vmatprep.subr.mxu1 %v4526_v8  ;;  %4143 = vmatprep.mubr.msk.f32.mxu0 %vm4527_vm1, %v4526_v8 }
 0x47d   : > { %4108 = vmatmul.mubr.msk.f32.vlgmr.msra.gmra.mxu1 %vm432_vm2, %v597_v50 }
 0x47e   : > { %4112 = vmatprep.mubr.msk.f32.mxu1 %vm4527_vm1, %v4526_v8 }
 0x531   : > { %v837_v56 = vpop.f32.mrf.mxu0 }
 0x532   : > { %v841_v57 = vmul.f32 0.35355338, %v837_v56 }
 0x533   : > { %v4119_v58 = vpop.f32.mrf.mxu0 }
 0x534   : > { %v842_v59 = vadd.f32 %v841_v57, %v4671_v36 }
 0x536   : > { %v843_v60 = vsel %vm432_vm2, %v842_v59, -inf }
 0x537   : > { %844 = vmax.xlane.f32.xlu1 %v843_v60 }
 0x539   : > { %v4706_v61 = vpop.f32.mrf.mxu1  ;;  %v1004_v62 = vpop.f32.mrf.mxu0 }
 0x53a   : > { %v1008_v3 = vmul.f32 0.35355338, %v1004_v62 }
 0x53b   : > { %v4104_v63 = vpop.f32.mrf.mxu1  ;;  %v4129_v1 = vpop.f32.mrf.mxu0 }
 0x53c   : > { %v1009_v13 = vadd.f32 %v1008_v3, %v4671_v36 }
 0x53d   : > { %v670_v2 = vpop.f32.mrf.mxu1 }
 0x53e   : > { %v674_v4 = vmul.f32 0.35355338, %v670_v2  ;;  %v1010_v14 = vsel %vm432_vm2, %v1009_v13, -inf }
 0x53f   : > { %v4109_v5 = vpop.f32.mrf.mxu1 }
 0x540   : > { %v675_v6 = vadd.f32 %v674_v4, %v4671_v36  ;;  %v3806_v4 = vld [vmem:[%s5405_s4 + $0x78] sm:$0xff]  ;;  %v3804_v5 = vld [vmem:[%s5405_s4 + $0x68] sm:$0xff] }
 0x542   : > { %v676_v12 = vsel %vm432_vm2, %v675_v6, -inf }
 0x543   : > { %677 = vmax.xlane.f32.xlu0 %v676_v12 }
 0x547   : > { %1011 = vmax.xlane.f32.xlu0 %v1010_v14 }
 0x5c0   : > { %v845_v15 = vpop.xlane.xlu1 %844 }
 0x5c1   : > { %v846_v16 = vsub.f32 %v842_v59, %v845_v15 }
 0x5c3   : > { %v847_v17 = vmul.f32 1.442695, %v846_v16  ;;  %v3825_v16 = vld [vmem:[%s5404_s3 + $0x2] ss:$0 sm:$0xff] }
 0x5c5   : > { %4452 = vpow2.f32 %v847_v17 }
 0x5cc   : > { %v678_v18 = vpop.xlane.xlu0 %677 }
 0x5cd   : > { %v679_v19 = vsub.f32 %v675_v6, %v678_v18  ;;  %v3803_v6 = vld [vmem:[%s5405_s4 + $0x60] sm:$0xff] }
 0x5ce   : > { %v3826_v18 = vld [vmem:[%s5404_s3 + $0x3] ss:$0 sm:$0xff] }
 0x5cf   : > { %v680_v20 = vmul.f32 1.442695, %v679_v19 }
 0x5d0   : > { %v1012_v21 = vpop.xlane.xlu0 %1011 }
 0x5d1   : > { %4454 = vpow2.f32 %v680_v20  ;;  %v1013_v22 = vsub.f32 %v1009_v13, %v1012_v21  ;;  %v326_v21 = vld [vmem:[%s5406_s5 + $0x78] sm:$0xff] }
 0x5d2   : > { %v4453_v24 = vpop.eup %4452 }
 0x5d3   : > { %v1014_v25 = vmul.f32 1.442695, %v1013_v22  ;;  %v849_v26 = vsel %vm432_vm2, %v4453_v24, 0.0  ;;  %v325_v22 = vld [vmem:[%s5406_s5 + $0x70] sm:$0xff] }
 0x5d4   : > { %850 = vadd.xlane.f32.xlu0 %v849_v26  ;;  %v322_v26 = vld [vmem:[%s5406_s5 + $0x58] sm:$0xff] }
 0x5d5   : > { %4456 = vpow2.f32 %v1014_v25  ;;  %v323_v25 = vld [vmem:[%s5406_s5 + $0x60] sm:$0xff] }
 0x5de   : > { %v4455_v27 = vpop.eup %4454 }
 0x5df   : > { %v682_v28 = vsel %vm432_vm2, %v4455_v27, 0.0 }
 0x5e0   : > { %683 = vadd.xlane.f32.xlu0 %v682_v28  ;;  %v320_v28 = vld [vmem:[%s5406_s5 + $0x48] sm:$0xff] }
 0x5e2   : > { %v4457_v29 = vpop.eup %4456 }
 0x5e3   : > { %v1016_v30 = vsel %vm432_vm2, %v4457_v29, 0.0 }
 0x5e4   : > { %1017 = vadd.xlane.f32.xlu1 %v1016_v30  ;;  %v318_v30 = vld [vmem:[%s5406_s5 + $0x38] sm:$0xff] }
 0x5f5   : > { %854 = vrot.lane.b32.xlu1 %v4649_v23, %s4538_s30 }
 0x5f6   : > { %687 = vrot.lane.b32.xlu0 %v4649_v23, %s4539_s7 }
 0x5f9   : > { %1021 = vrot.lane.b32.xlu1 %v4649_v23, %s4540_s8 }
 0x5fa   : > { %1122 = vrot.lane.b32.xlu0 %v4612_v9, %s4541_s9 }
 0x5fd   : > { %1124 = vrot.lane.b32.xlu1 %v4606_v7, %s4541_s9 }
 0x5fe   : > { %1120 = vrot.lane.b32.xlu0 %v4622_v10, %s4541_s9 }
 0x65d   : > { %v851_v31 = vpop.xlane.xlu0 %850 }
 0x669   : > { %v684_v32 = vpop.xlane.xlu0 %683 }
 0x66a   : > { %4458 = vrcp.f32 %v684_v32  ;;  %v316_v32 = vld [vmem:[%s5406_s5 + $0x28] sm:$0xff] }
 0x66b   : > { %4460 = vrcp.f32 %v851_v31  ;;  %v317_v31 = vld [vmem:[%s5406_s5 + $0x30] sm:$0xff] }
 0x66d   : > { %v1018_v34 = vpop.xlane.xlu1 %1017  ;;  %v688_v35 = vpop.permute.xlu0 %687 }
 0x66e   : > { %4111 = vmatpush3.msra.mxu1 %v688_v35  ;;  %4462 = vrcp.f32 %v1018_v34  ;;  %v315_v34 = vld [vmem:[%s5406_s5 + $0x20] sm:$0xff]  ;;  %v314_v35 = vld [vmem:[%s5406_s5 + $0x18] sm:$0xff] }
 0x66f   : > { %4120 = vmatprep.subr.mxu1 %v4526_v8 }
 0x671   : > { %v855_v37 = vpop.permute.xlu1 %854  ;;  %v1123_v42 = vpop.permute.xlu0 %1122 }
 0x675   : > { %v1022_v39 = vpop.permute.xlu1 %1021  ;;  %v1121_v43 = vpop.permute.xlu0 %1120 }
 0x677   : > { %v4459_v23 = vpop.eup %4458 }
 0x678   : > { %v686_v38 = vmul.f32 %v4459_v23, %v4455_v27  ;;  %v4461_v7 = vpop.eup %4460  ;;  %v321_v27 = vld [vmem:[%s5406_s5 + $0x50] sm:$0xff] }
 0x679   : > { %v853_v9 = vmul.f32 %v4461_v7, %v4453_v24  ;;  %v1125_v41 = vpop.permute.xlu1 %1124  ;;  %v324_v24 = vld [vmem:[%s5406_s5 + $0x68] sm:$0xff]  ;;  %v313_v23 = vld [vmem:[%s5406_s5 + $0x10] sm:$0xff]  ;;  %v3827_v7 = vld [vmem:[%s5404_s3 + $0x6] ss:$0 sm:$0xff] }
 0x67a   : > { %4113 = vmatmul.mubr.msk.f32.vlgmr.msra.gmra.mxu1 %vm432_vm2, %v686_v38  ;;  %4136 = vmatpush3.msra.mxu0 %v1125_v41  ;;  %v311_v38 = vld [vmem:[%s5406_s5] sm:$0xff] }
 0x67b   : > { %4121 = vmatpush3.msra.mxu1 %v855_v37  ;;  %4122 = vmatprep.mubr.msk.f32.mxu1 %vm4527_vm1, %v4526_v8  ;;  %v4463_v10 = vpop.eup %4462  ;;  %v312_v37 = vld [vmem:[%s5406_s5 + $0x8] sm:$0xff] }
 0x67c   : > { %4130 = vmatprep.subr.mxu1 %v4526_v8  ;;  %v1020_v40 = vmul.f32 %v4463_v10, %v4457_v29  ;;  %4137 = vmatprep.subr.mxu0 %v4526_v8  ;;  %v319_v29 = vld [vmem:[%s5406_s5 + $0x40] sm:$0xff] }
 0x67d   : > { %4138 = vmatpush3.msra.mxu0 %v1123_v42 }
 0x67e   : > { %4123 = vmatmul.mubr.msk.f32.vlgmr.msra.gmra.mxu1 %vm432_vm2, %v853_v9  ;;  %4139 = vmatprep.subr.mxu0 %v4526_v8 }
 0x67f   : > { %4131 = vmatpush3.msra.mxu1 %v1022_v39  ;;  %4132 = vmatprep.mubr.msk.f32.mxu1 %vm4527_vm1, %v4526_v8 }
 0x680   : > { %4146 = vmatprep.subr.mxu1 %v4526_v8  ;;  %4140 = vmatpush3.msra.mxu0 %v1121_v43 }
 0x681   : > { %4141 = vmatprep.subr.mxu0 %v4526_v8 }
 0x682   : > { %4133 = vmatmul.mubr.msk.f32.vlgmr.msra.gmra.mxu1 %vm432_vm2, %v1020_v40 }
 0x683   : > { %4154 = vmatprep.mubr.msk.f32.mxu1 %vm4527_vm1, %v4526_v8  ;;  %4147 = vmatpush3.msra.mxu1 %v3806_v4  ;;  %v3854_v4 = vld [vmem:[%s5404_s3 + $0x8] ss:$0 sm:$0xff] }
 0x684   : > { %4148 = vmatprep.subr.mxu1 %v4526_v8 }
 0x73a   : > { %v759_v44 = vpop.f32.mrf.mxu1 }
 0x73b   : > { %1098 = vrot.lane.b32.xlu1 %v759_v44, %s4542_s10 }
 0x73c   : > { %v4114_v45 = vpop.f32.mrf.mxu1 }
 0x73e   : > { %v926_v46 = vpop.f32.mrf.mxu1 }
 0x73f   : > { %1102 = vrot.lane.b32.xlu1 %v926_v46, %s5410_s11 }
 0x740   : > { %v4124_v47 = vpop.f32.mrf.mxu1 }
 0x742   : > { %v1093_v48 = vpop.f32.mrf.mxu1 }
 0x743   : > { %1118 = vrot.lane.b32.xlu1 %v4631_v11, %s4541_s9  ;;  %1106 = vrot.lane.b32.xlu0 %v1093_v48, %s5408_s12  ;;  %v3824_v11 = vld [vmem:[%s5404_s3 + $0x5] ss:$0 sm:$0xff] }
 0x744   : > { %v4134_v49 = vpop.f32.mrf.mxu1 }
 0x745   : > { %v3829_v49 = vld [vmem:[%s5404_s3 + $0x7] ss:$0 sm:$0xff] }
 0x7ad   : > { %v1099_v50 = vpop.permute.xlu1 %1098 }
 0x7ae   : > { %v1109_v52 = vsel %vm432_vm2, %v4706_v61, %v1099_v50 }
 0x7b1   : > { %v1103_v51 = vpop.permute.xlu1 %1102 }
 0x7b2   : > { %v1111_v53 = vsel %vm1110_vm7, %v1109_v52, %v1103_v51 }
 0x7b5   : > { %v1119_v54 = vpop.permute.xlu1 %1118  ;;  %v1107_v55 = vpop.permute.xlu0 %1106 }
 0x7b6   : > { %v1113_v56 = vsel %vm1112_vm8, %v1111_v53, %v1107_v55  ;;  %4142 = vmatpush3.msra.mxu0 %v1119_v54 }
 0x7b7   : > { %4144 = vmatmul.mubr.msk.f32.vlgmr.msra.gmra.mxu0 %vm327_vm0, %v1113_v56  ;;  %4157 = vmatprep.subr.mxu0 %v4526_v8 }
 0x7b8   : > { %4189 = vmatprep.mubr.msk.f32.mxu0 %vm4527_vm1, %v4526_v8  ;;  %4158 = vmatpush3.msra.mxu0 %v326_v21 }
 0x7b9   : > { %4159 = vmatprep.subr.mxu0 %v4526_v8 }
 0x7ba   : > { %4160 = vmatpush3.msra.mxu0 %v325_v22 }
 0x7bb   : > { %4161 = vmatprep.subr.mxu0 %v4526_v8 }
 0x7bc   : > { %4162 = vmatpush3.msra.mxu0 %v324_v24 }
 0x7bd   : > { %4163 = vmatprep.subr.mxu0 %v4526_v8 }
 0x7be   : > { %4164 = vmatpush3.msra.mxu0 %v323_v25 }
 0x7bf   : > { %4165 = vmatprep.subr.mxu0 %v4526_v8 }
 0x7c0   : > { %4166 = vmatpush3.msra.mxu0 %v322_v26 }
 0x7c1   : > { %4167 = vmatprep.subr.mxu0 %v4526_v8 }
 0x7c2   : > { %4168 = vmatpush3.msra.mxu0 %v321_v27 }
 0x7c3   : > { %4169 = vmatprep.subr.mxu0 %v4526_v8 }
 0x7c4   : > { %4170 = vmatpush3.msra.mxu0 %v320_v28 }
 0x7c5   : > { %4171 = vmatprep.subr.mxu0 %v4526_v8 }
 0x7c6   : > { %4172 = vmatpush3.msra.mxu0 %v319_v29 }
 0x7c7   : > { %4173 = vmatprep.subr.mxu0 %v4526_v8 }
 0x7c8   : > { %4174 = vmatpush3.msra.mxu0 %v318_v30 }
 0x7c9   : > { %4175 = vmatprep.subr.mxu0 %v4526_v8 }
 0x7ca   : > { %4176 = vmatpush3.msra.mxu0 %v317_v31 }
 0x7cb   : > { %4177 = vmatprep.subr.mxu0 %v4526_v8 }
 0x7cc   : > { %4178 = vmatpush3.msra.mxu0 %v316_v32 }
 0x7cd   : > { %4179 = vmatprep.subr.mxu0 %v4526_v8 }
 0x7ce   : > { %4180 = vmatpush3.msra.mxu0 %v315_v34 }
 0x7cf   : > { %4181 = vmatprep.subr.mxu0 %v4526_v8 }
 0x7d0   : > { %4182 = vmatpush3.msra.mxu0 %v314_v35 }
 0x7d1   : > { %4183 = vmatprep.subr.mxu0 %v4526_v8 }
 0x7d2   : > { %4184 = vmatpush3.msra.mxu0 %v313_v23 }
 0x7d3   : > { %4185 = vmatprep.subr.mxu0 %v4526_v8 }
 0x7d4   : > { %4186 = vmatpush3.msra.mxu0 %v312_v37 }
 0x7d5   : > { %4187 = vmatprep.subr.mxu0 %v4526_v8 }
 0x7d6   : > { %4188 = vmatpush3.msra.mxu0 %v311_v38 }
 0x7d7   : > { %4233 = vmatprep.subr.mxu0 %v4526_v8 }
 0x877   : > { %v1199_v57 = vpop.f32.mrf.mxu0 }
 0x878   : > { %v1203_v58 = vadd.f32 %v1199_v57, %v4597_v0  ;;  %v3805_v0 = vld [vmem:[%s5405_s4 + $0x70] sm:$0xff] }
 0x879   : > { %v4145_v59 = vpop.f32.mrf.mxu0  ;;  %4149 = vmatpush3.msra.mxu1 %v3805_v0 }
 0x87a   : > { %v4759_v60 = vadd.f32 %v3824_v11, %v1203_v58  ;;  %4150 = vmatprep.subr.mxu1 %v4526_v8  ;;  %v4872_v59 = vld [vmem:[%s5405_s4 + $0x38] sm:$0xff] }
 0x87b   : > { %4151 = vmatpush3.msra.mxu1 %v3804_v5  ;;  %v3855_v5 = vld [vmem:[%s5404_s3 + $0x9] ss:$0 sm:$0xff] }
 0x87c   : > { %v1209_v61 = vsel %vm327_vm0, %v4759_v60, 0.0  ;;  %4152 = vmatprep.subr.mxu1 %v4526_v8 }
 0x87d   : > { %1210 = vadd.xlane.f32.xlu0 %v1209_v61  ;;  %4153 = vmatpush3.msra.mxu1 %v3803_v6  ;;  %v4884_v61 = vld [vmem:[%s5405_s4 + $0x28] sm:$0xff] }
 0x87e   : > { %4192 = vmatprep.subr.mxu1 %v4526_v8 }
 0x906   : > { %v1211_v62 = vpop.xlane.xlu0 %1210 }
 0x907   : > { %v1212_v63 = vmul.f32 0.03125, %v1211_v62  ;;  %v4891_v62 = vld [vmem:[%s5405_s4 + $0x20] sm:$0xff] }
 0x909   : > { %v1213_v1 = vsub.f32 %v4759_v60, %v1212_v63 }
 0x90b   : > { %v1214_v2 = vmul.f32 %v1213_v1, %v1213_v1 }
 0x90d   : > { %v1215_v3 = vsel %vm327_vm0, %v1214_v2, 0.0 }
 0x90e   : > { %1216 = vadd.xlane.f32.xlu1 %v1215_v3 }
 0x997   : > { %v1217_v12 = vpop.xlane.xlu1 %1216 }
 0x998   : > { %v1218_v13 = vmul.f32 0.03125, %v1217_v12 }
 0x99a   : > { %v1219_v14 = vadd.f32 1e-05, %v1218_v13  ;;  %v3856_v13 = vld [vmem:[%s5404_s3 + $0xc] ss:$0 sm:$0xff] }
 0x99c   : > { %4464 = vrsqrt.f32 %v1219_v14 }
 0x9a9   : > { %v4465_v15 = vpop.eup %4464 }
 0x9aa   : > { %v1221_v17 = vmul.f32 %v4465_v15, %v1213_v1 }
 0x9ac   : > { %v1226_v19 = vmul.f32 %v3825_v16, %v1221_v17 }
 0x9ae   : > { %v1231_v20 = vadd.f32 %v3826_v18, %v1226_v19 }
 0x9b0   : > { %4155 = vmatmul.mubr.msk.f32.vlgmr.msra.gmra.mxu1 %vm327_vm0, %v1231_v20 }
 0x9b1   : > { %4200 = vmatprep.mubr.msk.f32.mxu1 %vm4527_vm1, %v4526_v8  ;;  %4193 = vmatpush3.msra.mxu1 %v4872_v59 }
 0x9b2   : > { %4194 = vmatprep.subr.mxu1 %v4526_v8 }
 0xa70   : > { %v1305_v9 = vpop.f32.mrf.mxu1 }
 0xa71   : > { %v1306_v10 = vadd.f32 %v3827_v7, %v1305_v9 }
 0xa72   : > { %v4156_v39 = vpop.f32.mrf.mxu1 }
 0xa73   : > { %v1310_v40 = vmul.f32 0.044715, %v1306_v10  ;;  %v1309_v46 = vmul.f32 0.5, %v1306_v10 }
 0xa75   : > { %v1311_v41 = vmul.f32 %v1310_v40, %v1306_v10 }
 0xa77   : > { %v1312_v42 = vmul.f32 %v1311_v41, %v1306_v10 }
 0xa79   : > { %v1313_v43 = vadd.f32 %v1312_v42, %v1306_v10 }
 0xa7b   : > { %v1314_v44 = vmul.f32 0.7978846, %v1313_v43 }
 0xa7d   : > { %4466 = vtanh.f32 %v1314_v44 }
 0xa8a   : > { %v4467_v45 = vpop.eup %4466 }
 0xa8b   : > { %v1316_v47 = vadd.f32 1.0, %v4467_v45 }
 0xa8d   : > { %v1317_v48 = vmul.f32 %v1316_v47, %v1309_v46 }
 0xa8f   : > { %4190 = vmatmul.mubr.f32.vlgmr.msra.gmra.mxu0 %v1317_v48 }
 0xa90   : > { %4235 = vmatprep.mubr.msk.f32.mxu0 %vm4527_vm1, %v4526_v8 }
 0xb4f   : > { %v1384_v50 = vpop.f32.mrf.mxu0 }
 0xb50   : > { %v1388_v51 = vadd.f32 %v1384_v50, %v4759_v60  ;;  %v4878_v60 = vld [vmem:[%s5405_s4 + $0x30] sm:$0xff] }
 0xb51   : > { %v4191_v52 = vpop.f32.mrf.mxu0  ;;  %4195 = vmatpush3.msra.mxu1 %v4878_v60 }
 0xb52   : > { %v4863_v53 = vadd.f32 %v3829_v49, %v1388_v51  ;;  %4196 = vmatprep.subr.mxu1 %v4526_v8 }
 0xb53   : > { %4197 = vmatpush3.msra.mxu1 %v4884_v61 }
 0xb54   : > { %v1429_v54 = vsel %vm327_vm0, %v4863_v53, 0.0  ;;  %4198 = vmatprep.subr.mxu1 %v4526_v8 }
 0xb55   : > { %1430 = vadd.xlane.f32.xlu0 %v1429_v54  ;;  %4199 = vmatpush3.msra.mxu1 %v4891_v62 }
 0xb56   : > { %4203 = vmatprep.subr.mxu1 %v4526_v8 }
 0xbde   : > { %v1431_v55 = vpop.xlane.xlu0 %1430 }
 0xbdf   : > { %v1432_v56 = vmul.f32 0.03125, %v1431_v55 }
 0xbe1   : > { %v1433_v11 = vsub.f32 %v4863_v53, %v1432_v56 }
 0xbe3   : > { %v1434_v57 = vmul.f32 %v1433_v11, %v1433_v11 }
 0xbe5   : > { %v1435_v58 = vsel %vm327_vm0, %v1434_v57, 0.0 }
 0xbe6   : > { %1436 = vadd.xlane.f32.xlu0 %v1435_v58 }
 0xc6f   : > { %v1437_v63 = vpop.xlane.xlu0 %1436 }
 0xc70   : > { %v1438_v1 = vmul.f32 0.03125, %v1437_v63 }
 0xc72   : > { %v1439_v2 = vadd.f32 1e-05, %v1438_v1 }
 0xc74   : > { %4468 = vrsqrt.f32 %v1439_v2 }
 0xc81   : > { %v4469_v3 = vpop.eup %4468 }
 0xc82   : > { %v1441_v0 = vmul.f32 %v4469_v3, %v1433_v11 }
 0xc84   : > { %v1446_v6 = vmul.f32 %v3854_v4, %v1441_v0 }
 0xc86   : > { %v1451_v12 = vadd.f32 %v3855_v5, %v1446_v6 }
 0xc88   : > { %4201 = vmatmul.mubr.msk.f32.vlgmr.msra.gmra.mxu1 %vm327_vm0, %v1451_v12 }
 0xc89   : > { %4205 = vmatprep.mubr.msk.f32.mxu1 %vm4527_vm1, %v4526_v8 }
 0xd48   : > { %v1525_v14 = vpop.f32.mrf.mxu1 }
 0xd49   : > { %v4909_v15 = vadd.f32 %v3856_v13, %v1525_v14 }
 0xd4a   : > { %v4202_v16 = vpop.f32.mrf.mxu1 }
 0xd4b   : > { %1530 = vrot.lane.b32.xlu0 %v4909_v15, %s4529_s18 }
 0xd4f   : > { %1697 = vrot.lane.b32.xlu0 %v4909_v15, %s4530_s19 }
 0xdbd   : > { %v1531_v17 = vpop.permute.xlu0 %1530 }
 0xdbe   : > { %4204 = vmatpush3.xpose.msk.msra.mxu1 %vm432_vm2, %v1531_v17 }
 0xdbf   : > { %4208 = vmatprep.subr.mxu1 %v4526_v8 }
 0xdc1   : > { %4206 = vmatmul.mubr.msk.f32.vlgmr.msra.gmra.mxu1 %vm432_vm2, %v4909_v15  ;;  %v1698_v34 = vpop.permute.xlu0 %1697 }
 0xdc2   : > { %4210 = vmatprep.mubr.msk.f32.mxu1 %vm4527_vm1, %v4526_v8 }
 0xe81   : > { %v1602_v18 = vpop.f32.mrf.mxu1 }
 0xe82   : > { %v1606_v19 = vmul.f32 0.35355338, %v1602_v18 }
 0xe83   : > { %v4207_v20 = vpop.f32.mrf.mxu1 }
 0xe84   : > { %v1607_v21 = vadd.f32 %v1606_v19, %v4671_v36 }
 0xe86   : > { %v1608_v22 = vsel %vm432_vm2, %v1607_v21, -inf }
 0xe87   : > { %1609 = vmax.xlane.f32.xlu1 %v1608_v22 }
 0xe98   : > { %1619 = vrot.lane.b32.xlu1 %v4909_v15, %s4528_s17 }
 0xf10   : > { %v1610_v24 = vpop.xlane.xlu1 %1609 }
 0xf11   : > { %v1611_v25 = vsub.f32 %v1607_v21, %v1610_v24 }
 0xf13   : > { %v1612_v26 = vmul.f32 1.442695, %v1611_v25 }
 0xf14   : > { %v1620_v27 = vpop.permute.xlu1 %1619 }
 0xf15   : > { %4470 = vpow2.f32 %v1612_v26  ;;  %4209 = vmatpush3.msra.mxu1 %v1620_v27 }
 0xf16   : > { %4213 = vmatprep.subr.mxu1 %v4526_v8 }
 0xf22   : > { %v4471_v28 = vpop.eup %4470 }
 0xf23   : > { %v1614_v29 = vsel %vm432_vm2, %v4471_v28, 0.0 }
 0xf24   : > { %1615 = vadd.xlane.f32.xlu1 %v1614_v29 }
 0xf35   : > { %1695 = vrot.lane.b32.xlu1 %v4909_v15, %s4534_s26 }
 0xf39   : > { %1864 = vrot.lane.b32.xlu1 %v4909_v15, %s4533_s22 }
 0xfad   : > { %v1616_v30 = vpop.xlane.xlu1 %1615 }
 0xfae   : > { %4472 = vrcp.f32 %v1616_v30 }
 0xfb1   : > { %v1696_v35 = vpop.permute.xlu1 %1695 }
 0xfb5   : > { %v1865_v46 = vpop.permute.xlu1 %1864 }
 0xfbb   : > { %v4473_v31 = vpop.eup %4472 }
 0xfbc   : > { %v1618_v32 = vmul.f32 %v4473_v31, %v4471_v28 }
 0xfbe   : > { %4211 = vmatmul.mubr.msk.f32.vlgmr.msra.gmra.mxu1 %vm432_vm2, %v1618_v32 }
 0xfbf   : > { %4214 = vmatpush3.xpose.msk.msra.mxu1 %vm432_vm2, %v1698_v34  ;;  %4215 = vmatprep.mubr.msk.f32.mxu1 %vm4527_vm1, %v4526_v8 }
 0xfc0   : > { %4218 = vmatprep.subr.mxu1 %v4526_v8 }
 0xfc2   : > { %4216 = vmatmul.mubr.msk.f32.vlgmr.msra.gmra.mxu1 %vm432_vm2, %v1696_v35 }
 0xfc3   : > { %4220 = vmatprep.mubr.msk.f32.mxu1 %vm4527_vm1, %v4526_v8 }
0x107e   : > { %v4939_v23 = vpop.f32.mrf.mxu1 }
0x1080   : > { %v4212_v37 = vpop.f32.mrf.mxu1 }
0x1082   : > { %v1769_v38 = vpop.f32.mrf.mxu1 }
0x1083   : > { %v1773_v7 = vmul.f32 0.35355338, %v1769_v38 }
0x1084   : > { %v4217_v9 = vpop.f32.mrf.mxu1 }
0x1085   : > { %v1774_v10 = vadd.f32 %v1773_v7, %v4671_v36 }
0x1087   : > { %v1775_v39 = vsel %vm432_vm2, %v1774_v10, -inf }
0x1088   : > { %1776 = vmax.xlane.f32.xlu0 %v1775_v39 }
0x109e   : > { %1786 = vrot.lane.b32.xlu0 %v4909_v15, %s4539_s7 }
0x10a2   : > { %1862 = vrot.lane.b32.xlu0 %v4909_v15, %s4535_s27 }
0x10a6   : > { %2029 = vrot.lane.b32.xlu0 %v4909_v15, %s4537_s29 }
0x1111   : > { %v1777_v40 = vpop.xlane.xlu0 %1776 }
0x1112   : > { %v1778_v41 = vsub.f32 %v1774_v10, %v1777_v40 }
0x1114   : > { %v1779_v42 = vmul.f32 1.442695, %v1778_v41 }
0x1115   : > { %v1787_v43 = vpop.permute.xlu0 %1786 }
0x1116   : > { %4474 = vpow2.f32 %v1779_v42  ;;  %4219 = vmatpush3.msra.mxu1 %v1787_v43 }
0x1117   : > { %4223 = vmatprep.subr.mxu1 %v4526_v8 }
0x1119   : > { %v1863_v48 = vpop.permute.xlu0 %1862 }
0x111d   : > { %v2030_v50 = vpop.permute.xlu0 %2029 }
0x1123   : > { %v4475_v44 = vpop.eup %4474 }
0x1124   : > { %v1781_v45 = vsel %vm432_vm2, %v4475_v44, 0.0 }
0x1125   : > { %1782 = vadd.xlane.f32.xlu1 %v1781_v45 }
0x1136   : > { %2031 = vrot.lane.b32.xlu1 %v4909_v15, %s4536_s28 }
0x11ae   : > { %v1783_v47 = vpop.xlane.xlu1 %1782 }
0x11af   : > { %4476 = vrcp.f32 %v1783_v47 }
0x11b2   : > { %v2032_v49 = vpop.permute.xlu1 %2031 }
0x11b3   : > { %4234 = vmatpush3.xpose.msk.msra.mxu0 %vm432_vm2, %v2032_v49  ;;  %v3835_v49 = vld [vmem:[%s5405_s4 + $0x88] sm:$0xff] }
0x11b4   : > { %4243 = vmatprep.subr.mxu0 %v4526_v8 }
0x11b6   : > { %4236 = vmatmul.mubr.msk.f32.vlgmr.msra.gmra.mxu0 %vm432_vm2, %v2030_v50  ;;  %v3834_v50 = vld [vmem:[%s5405_s4 + $0x80] sm:$0xff] }
0x11b7   : > { %4251 = vmatprep.mubr.msk.f32.mxu0 %vm4527_vm1, %v4526_v8 }
0x11bc   : > { %v4477_v51 = vpop.eup %4476 }
0x11bd   : > { %v1785_v52 = vmul.f32 %v4477_v51, %v4475_v44 }
0x11bf   : > { %4221 = vmatmul.mubr.msk.f32.vlgmr.msra.gmra.mxu1 %vm432_vm2, %v1785_v52 }
0x11c0   : > { %4224 = vmatpush3.xpose.msk.msra.mxu1 %vm432_vm2, %v1865_v46  ;;  %4225 = vmatprep.mubr.msk.f32.mxu1 %vm4527_vm1, %v4526_v8 }
0x11c1   : > { %4228 = vmatprep.subr.mxu1 %v4526_v8 }
0x11c3   : > { %4226 = vmatmul.mubr.msk.f32.vlgmr.msra.gmra.mxu1 %vm432_vm2, %v1863_v48  ;;  %v3837_v48 = vld [vmem:[%s5405_s4 + $0x98] sm:$0xff] }
0x11c4   : > { %4230 = vmatprep.mubr.msk.f32.mxu1 %vm4527_vm1, %v4526_v8 }
0x1276   : > { %v2103_v54 = vpop.f32.mrf.mxu0 }
0x1277   : > { %v2107_v55 = vmul.f32 0.35355338, %v2103_v54 }
0x1278   : > { %v4237_v56 = vpop.f32.mrf.mxu0 }
0x1279   : > { %v2108_v11 = vadd.f32 %v2107_v55, %v4671_v36  ;;  %v3872_v56 = vld [vmem:[%s5404_s3 + $0xa] ss:$0 sm:$0xff] }
0x127b   : > { %v2109_v57 = vsel %vm432_vm2, %v2108_v11, -inf }
0x127c   : > { %2110 = vmax.xlane.f32.xlu0 %v2109_v57  ;;  %v3873_v57 = vld [vmem:[%s5404_s3 + $0xb] ss:$0 sm:$0xff] }
0x127f   : > { %v1858_v58 = vpop.f32.mrf.mxu1 }
0x1281   : > { %v4222_v63 = vpop.f32.mrf.mxu1 }
0x1283   : > { %v1936_v1 = vpop.f32.mrf.mxu1 }
0x1284   : > { %v1940_v2 = vmul.f32 0.35355338, %v1936_v1  ;;  %v3853_v1 = vld [vmem:[%s5406_s5 + $0xf8] sm:$0xff] }
0x1285   : > { %v4227_v3 = vpop.f32.mrf.mxu1 }
0x1286   : > { %v1941_v4 = vadd.f32 %v1940_v2, %v4671_v36  ;;  %v3852_v2 = vld [vmem:[%s5406_s5 + $0xf0] sm:$0xff]  ;;  %v3851_v3 = vld [vmem:[%s5406_s5 + $0xe8] sm:$0xff] }
0x1288   : > { %v1942_v0 = vsel %vm432_vm2, %v1941_v4, -inf }
0x1289   : > { %1943 = vmax.xlane.f32.xlu1 %v1942_v0  ;;  %v3849_v0 = vld [vmem:[%s5406_s5 + $0xd8] sm:$0xff] }
0x129a   : > { %1953 = vrot.lane.b32.xlu1 %v4909_v15, %s4538_s30 }
0x129e   : > { %2221 = vrot.lane.b32.xlu1 %v4872_v59, %s4541_s9 }
0x12a2   : > { %2219 = vrot.lane.b32.xlu1 %v4878_v60, %s4541_s9 }
0x12a6   : > { %2197 = vrot.lane.b32.xlu1 %v1858_v58, %s4542_s10 }
0x1305   : > { %v2111_v5 = vpop.xlane.xlu0 %2110 }
0x1306   : > { %v2112_v6 = vsub.f32 %v2108_v11, %v2111_v5  ;;  %v3848_v5 = vld [vmem:[%s5406_s5 + $0xd0] sm:$0xff] }
0x1308   : > { %v2113_v12 = vmul.f32 1.442695, %v2112_v6  ;;  %v3847_v6 = vld [vmem:[%s5406_s5 + $0xc8] sm:$0xff] }
0x130a   : > { %4478 = vpow2.f32 %v2113_v12  ;;  %v3846_v12 = vld [vmem:[%s5406_s5 + $0xc0] sm:$0xff] }
0x1312   : > { %v1944_v13 = vpop.xlane.xlu1 %1943 }
0x1313   : > { %v1945_v14 = vsub.f32 %v1941_v4, %v1944_v13  ;;  %v3850_v4 = vld [vmem:[%s5406_s5 + $0xe0] sm:$0xff]  ;;  %v3845_v13 = vld [vmem:[%s5406_s5 + $0xb8] sm:$0xff] }
0x1315   : > { %v1946_v16 = vmul.f32 1.442695, %v1945_v14  ;;  %v3844_v14 = vld [vmem:[%s5406_s5 + $0xb0] sm:$0xff] }
0x1316   : > { %v1954_v17 = vpop.permute.xlu1 %1953 }
0x1317   : > { %v4479_v18 = vpop.eup %4478  ;;  %4480 = vpow2.f32 %v1946_v16  ;;  %4229 = vmatpush3.msra.mxu1 %v1954_v17  ;;  %v3843_v16 = vld [vmem:[%s5406_s5 + $0xa8] sm:$0xff]  ;;  %v3842_v17 = vld [vmem:[%s5406_s5 + $0xa0] sm:$0xff] }
0x1318   : > { %v2115_v19 = vsel %vm432_vm2, %v4479_v18, 0.0  ;;  %4238 = vmatprep.subr.mxu1 %v4526_v8 }
0x1319   : > { %2116 = vadd.xlane.f32.xlu0 %v2115_v19  ;;  %v3840_v19 = vld [vmem:[%s5406_s5 + $0x90] sm:$0xff] }
0x131a   : > { %v2222_v59 = vpop.permute.xlu1 %2221 }
0x131b   : > { %4244 = vmatpush3.msra.mxu0 %v2222_v59  ;;  %v3839_v59 = vld [vmem:[%s5406_s5 + $0x88] sm:$0xff] }
0x131c   : > { %4245 = vmatprep.subr.mxu0 %v4526_v8 }
0x131e   : > { %v2220_v60 = vpop.permute.xlu1 %2219 }
0x131f   : > { %4246 = vmatpush3.msra.mxu0 %v2220_v60  ;;  %v3838_v60 = vld [vmem:[%s5406_s5 + $0x80] sm:$0xff] }
0x1320   : > { %4247 = vmatprep.subr.mxu0 %v4526_v8 }
0x1322   : > { %v2198_v34 = vpop.permute.xlu1 %2197 }
0x1323   : > { %v2208_v37 = vsel %vm432_vm2, %v4939_v23, %v2198_v34 }
0x1324   : > { %v4481_v20 = vpop.eup %4480 }
0x1325   : > { %v1948_v21 = vsel %vm432_vm2, %v4481_v20, 0.0 }
0x1326   : > { %1949 = vadd.xlane.f32.xlu0 %v1948_v21 }
0x133c   : > { %2120 = vrot.lane.b32.xlu0 %v4909_v15, %s4540_s8 }
0x1340   : > { %2217 = vrot.lane.b32.xlu0 %v4884_v61, %s4541_s9 }
0x13a2   : > { %v2117_v22 = vpop.xlane.xlu0 %2116 }
0x13af   : > { %v1950_v24 = vpop.xlane.xlu0 %1949 }
0x13b0   : > { %4482 = vrcp.f32 %v1950_v24 }
0x13b1   : > { %4484 = vrcp.f32 %v2117_v22 }
0x13b3   : > { %v2121_v28 = vpop.permute.xlu0 %2120 }
0x13b7   : > { %v2218_v61 = vpop.permute.xlu0 %2217 }
0x13b8   : > { %4248 = vmatpush3.msra.mxu0 %v2218_v61 }
0x13b9   : > { %4249 = vmatprep.subr.mxu0 %v4526_v8 }
0x13bd   : > { %v4483_v25 = vpop.eup %4482 }
0x13be   : > { %v1952_v26 = vmul.f32 %v4483_v25, %v4481_v20  ;;  %v4485_v27 = vpop.eup %4484  ;;  %v3874_v20 = vld [vmem:[%s5404_s3 + $0xe] ss:$0 sm:$0xff] }
0x13bf   : > { %v2119_v29 = vmul.f32 %v4485_v27, %v4479_v18  ;;  %v3841_v18 = vld [vmem:[%s5406_s5 + $0x98] sm:$0xff] }
0x13c0   : > { %4231 = vmatmul.mubr.msk.f32.vlgmr.msra.gmra.mxu1 %vm432_vm2, %v1952_v26 }
0x13c1   : > { %4239 = vmatpush3.msra.mxu1 %v2121_v28  ;;  %4240 = vmatprep.mubr.msk.f32.mxu1 %vm4527_vm1, %v4526_v8 }
0x13c2   : > { %4254 = vmatprep.subr.mxu1 %v4526_v8 }
0x13c4   : > { %4241 = vmatmul.mubr.msk.f32.vlgmr.msra.gmra.mxu1 %vm432_vm2, %v2119_v29 }
0x13c5   : > { %4262 = vmatprep.mubr.msk.f32.mxu1 %vm4527_vm1, %v4526_v8  ;;  %4255 = vmatpush3.msra.mxu1 %v3837_v48  ;;  %v3901_v48 = vld [vmem:[%s5404_s3 + $0x10] ss:$0 sm:$0xff] }
0x13c6   : > { %4256 = vmatprep.subr.mxu1 %v4526_v8 }
0x1480   : > { %v2025_v15 = vpop.f32.mrf.mxu1 }
0x1481   : > { %2201 = vrot.lane.b32.xlu1 %v2025_v15, %s5410_s11 }
0x1482   : > { %v4232_v30 = vpop.f32.mrf.mxu1 }
0x1484   : > { %v2192_v31 = vpop.f32.mrf.mxu1 }
0x1485   : > { %2215 = vrot.lane.b32.xlu1 %v4891_v62, %s4541_s9  ;;  %2205 = vrot.lane.b32.xlu0 %v2192_v31, %s5411_s13  ;;  %v3871_v62 = vld [vmem:[%s5404_s3 + $0xd] ss:$0 sm:$0xff] }
0x1486   : > { %v4242_v32 = vpop.f32.mrf.mxu1 }
0x1487   : > { %v3876_v32 = vld [vmem:[%s5404_s3 + $0xf] ss:$0 sm:$0xff] }
0x14f3   : > { %v2202_v35 = vpop.permute.xlu1 %2201 }
0x14f4   : > { %v2209_v38 = vsel %vm1110_vm7, %v2208_v37, %v2202_v35 }
0x14f7   : > { %v2216_v7 = vpop.permute.xlu1 %2215  ;;  %v2206_v9 = vpop.permute.xlu0 %2205 }
0x14f8   : > { %v2210_v10 = vsel %vm1112_vm8, %v2209_v38, %v2206_v9  ;;  %4250 = vmatpush3.msra.mxu0 %v2216_v7 }
0x14f9   : > { %4252 = vmatmul.mubr.msk.f32.vlgmr.msra.gmra.mxu0 %vm327_vm0, %v2210_v10  ;;  %4265 = vmatprep.subr.mxu0 %v4526_v8 }
0x14fa   : > { %4297 = vmatprep.mubr.msk.f32.mxu0 %vm4527_vm1, %v4526_v8  ;;  %4266 = vmatpush3.msra.mxu0 %v3853_v1 }
0x14fb   : > { %4267 = vmatprep.subr.mxu0 %v4526_v8 }
0x14fc   : > { %4268 = vmatpush3.msra.mxu0 %v3852_v2 }
0x14fd   : > { %4269 = vmatprep.subr.mxu0 %v4526_v8 }
0x14fe   : > { %4270 = vmatpush3.msra.mxu0 %v3851_v3 }
0x14ff   : > { %4271 = vmatprep.subr.mxu0 %v4526_v8 }
0x1500   : > { %4272 = vmatpush3.msra.mxu0 %v3850_v4 }
0x1501   : > { %4273 = vmatprep.subr.mxu0 %v4526_v8 }
0x1502   : > { %4274 = vmatpush3.msra.mxu0 %v3849_v0 }
0x1503   : > { %4275 = vmatprep.subr.mxu0 %v4526_v8 }
0x1504   : > { %4276 = vmatpush3.msra.mxu0 %v3848_v5 }
0x1505   : > { %4277 = vmatprep.subr.mxu0 %v4526_v8 }
0x1506   : > { %4278 = vmatpush3.msra.mxu0 %v3847_v6 }
0x1507   : > { %4279 = vmatprep.subr.mxu0 %v4526_v8 }
0x1508   : > { %4280 = vmatpush3.msra.mxu0 %v3846_v12 }
0x1509   : > { %4281 = vmatprep.subr.mxu0 %v4526_v8 }
0x150a   : > { %4282 = vmatpush3.msra.mxu0 %v3845_v13 }
0x150b   : > { %4283 = vmatprep.subr.mxu0 %v4526_v8 }
0x150c   : > { %4284 = vmatpush3.msra.mxu0 %v3844_v14 }
0x150d   : > { %4285 = vmatprep.subr.mxu0 %v4526_v8 }
0x150e   : > { %4286 = vmatpush3.msra.mxu0 %v3843_v16 }
0x150f   : > { %4287 = vmatprep.subr.mxu0 %v4526_v8 }
0x1510   : > { %4288 = vmatpush3.msra.mxu0 %v3842_v17 }
0x1511   : > { %4289 = vmatprep.subr.mxu0 %v4526_v8 }
0x1512   : > { %4290 = vmatpush3.msra.mxu0 %v3841_v18 }
0x1513   : > { %4291 = vmatprep.subr.mxu0 %v4526_v8 }
0x1514   : > { %4292 = vmatpush3.msra.mxu0 %v3840_v19 }
0x1515   : > { %4293 = vmatprep.subr.mxu0 %v4526_v8 }
0x1516   : > { %4294 = vmatpush3.msra.mxu0 %v3839_v59 }
0x1517   : > { %4295 = vmatprep.subr.mxu0 %v4526_v8 }
0x1518   : > { %4296 = vmatpush3.msra.mxu0 %v3838_v60 }
0x1519   : > { %4341 = vmatprep.subr.mxu0 %v4526_v8 }
0x15b9   : > { %v2296_v39 = vpop.f32.mrf.mxu0 }
0x15ba   : > { %v2300_v23 = vadd.f32 %v2296_v39, %v4863_v53  ;;  %v3836_v53 = vld [vmem:[%s5405_s4 + $0x90] sm:$0xff] }
0x15bb   : > { %v4253_v40 = vpop.f32.mrf.mxu0  ;;  %4257 = vmatpush3.msra.mxu1 %v3836_v53 }
0x15bc   : > { %v5010_v41 = vadd.f32 %v3871_v62, %v2300_v23  ;;  %4258 = vmatprep.subr.mxu1 %v4526_v8  ;;  %v5123_v40 = vld [vmem:[%s5405_s4 + $0x58] sm:$0xff] }
0x15bd   : > { %4259 = vmatpush3.msra.mxu1 %v3835_v49  ;;  %v3902_v49 = vld [vmem:[%s5404_s3 + $0x11] ss:$0 sm:$0xff] }
0x15be   : > { %v2306_v42 = vsel %vm327_vm0, %v5010_v41, 0.0  ;;  %4260 = vmatprep.subr.mxu1 %v4526_v8 }
0x15bf   : > { %2307 = vadd.xlane.f32.xlu0 %v2306_v42  ;;  %4261 = vmatpush3.msra.mxu1 %v3834_v50  ;;  %v5135_v42 = vld [vmem:[%s5405_s4 + $0x48] sm:$0xff] }
0x15c0   : > { %4300 = vmatprep.subr.mxu1 %v4526_v8 }
0x1648   : > { %v2308_v43 = vpop.xlane.xlu0 %2307 }
0x1649   : > { %v2309_v44 = vmul.f32 0.03125, %v2308_v43  ;;  %v5142_v43 = vld [vmem:[%s5405_s4 + $0x40] sm:$0xff] }
0x164b   : > { %v2310_v45 = vsub.f32 %v5010_v41, %v2309_v44 }
0x164d   : > { %v2311_v46 = vmul.f32 %v2310_v45, %v2310_v45 }
0x164f   : > { %v2312_v47 = vsel %vm327_vm0, %v2311_v46, 0.0 }
0x1650   : > { %2313 = vadd.xlane.f32.xlu1 %v2312_v47 }
0x16d9   : > { %v2314_v51 = vpop.xlane.xlu1 %2313 }
0x16da   : > { %v2315_v52 = vmul.f32 0.03125, %v2314_v51 }
0x16dc   : > { %v2316_v54 = vadd.f32 1e-05, %v2315_v52  ;;  %v3903_v52 = vld [vmem:[%s5404_s3 + $0x14] ss:$0 sm:$0xff] }
0x16de   : > { %4486 = vrsqrt.f32 %v2316_v54 }
0x16eb   : > { %v4487_v55 = vpop.eup %4486 }
0x16ec   : > { %v2318_v11 = vmul.f32 %v4487_v55, %v2310_v45 }
0x16ee   : > { %v2323_v58 = vmul.f32 %v3872_v56, %v2318_v11 }
0x16f0   : > { %v2328_v63 = vadd.f32 %v3873_v57, %v2323_v58 }
0x16f2   : > { %4263 = vmatmul.mubr.msk.f32.vlgmr.msra.gmra.mxu1 %vm327_vm0, %v2328_v63 }
0x16f3   : > { %4308 = vmatprep.mubr.msk.f32.mxu1 %vm4527_vm1, %v4526_v8  ;;  %4301 = vmatpush3.msra.mxu1 %v5123_v40 }
0x16f4   : > { %4302 = vmatprep.subr.mxu1 %v4526_v8 }
0x17b2   : > { %v2402_v21 = vpop.f32.mrf.mxu1 }
0x17b3   : > { %v2403_v22 = vadd.f32 %v3874_v20, %v2402_v21 }
0x17b4   : > { %v4264_v24 = vpop.f32.mrf.mxu1 }
0x17b5   : > { %v2407_v25 = vmul.f32 0.044715, %v2403_v22  ;;  %v2406_v15 = vmul.f32 0.5, %v2403_v22 }
0x17b7   : > { %v2408_v26 = vmul.f32 %v2407_v25, %v2403_v22 }
0x17b9   : > { %v2409_v27 = vmul.f32 %v2408_v26, %v2403_v22 }
0x17bb   : > { %v2410_v28 = vadd.f32 %v2409_v27, %v2403_v22 }
0x17bd   : > { %v2411_v29 = vmul.f32 0.7978846, %v2410_v28 }
0x17bf   : > { %4488 = vtanh.f32 %v2411_v29 }
0x17cc   : > { %v4489_v61 = vpop.eup %4488 }
0x17cd   : > { %v2413_v30 = vadd.f32 1.0, %v4489_v61 }
0x17cf   : > { %v2414_v31 = vmul.f32 %v2413_v30, %v2406_v15 }
0x17d1   : > { %4298 = vmatmul.mubr.f32.vlgmr.msra.gmra.mxu0 %v2414_v31 }
0x17d2   : > { %4343 = vmatprep.mubr.msk.f32.mxu0 %vm4527_vm1, %v4526_v8 }
0x1891   : > { %v2481_v34 = vpop.f32.mrf.mxu0 }
0x1892   : > { %v2485_v35 = vadd.f32 %v2481_v34, %v5010_v41  ;;  %v5129_v41 = vld [vmem:[%s5405_s4 + $0x50] sm:$0xff] }
0x1893   : > { %v4299_v37 = vpop.f32.mrf.mxu0  ;;  %4303 = vmatpush3.msra.mxu1 %v5129_v41 }
0x1894   : > { %v5114_v38 = vadd.f32 %v3876_v32, %v2485_v35  ;;  %4304 = vmatprep.subr.mxu1 %v4526_v8 }
0x1895   : > { %4305 = vmatpush3.msra.mxu1 %v5135_v42 }
0x1896   : > { %v2526_v7 = vsel %vm327_vm0, %v5114_v38, 0.0  ;;  %4306 = vmatprep.subr.mxu1 %v4526_v8 }
0x1897   : > { %2527 = vadd.xlane.f32.xlu0 %v2526_v7  ;;  %4307 = vmatpush3.msra.mxu1 %v5142_v43 }
0x1898   : > { %4311 = vmatprep.subr.mxu1 %v4526_v8 }
0x1920   : > { %v2528_v9 = vpop.xlane.xlu0 %2527 }
0x1921   : > { %v2529_v10 = vmul.f32 0.03125, %v2528_v9 }
0x1923   : > { %v2530_v62 = vsub.f32 %v5114_v38, %v2529_v10 }
0x1925   : > { %v2531_v39 = vmul.f32 %v2530_v62, %v2530_v62 }
0x1927   : > { %v2532_v23 = vsel %vm327_vm0, %v2531_v39, 0.0 }
0x1928   : > { %2533 = vadd.xlane.f32.xlu0 %v2532_v23 }
0x19b1   : > { %v2534_v44 = vpop.xlane.xlu0 %2533 }
0x19b2   : > { %v2535_v45 = vmul.f32 0.03125, %v2534_v44 }
0x19b4   : > { %v2536_v46 = vadd.f32 1e-05, %v2535_v45 }
0x19b6   : > { %4490 = vrsqrt.f32 %v2536_v46 }
0x19c3   : > { %v4491_v47 = vpop.eup %4490 }
0x19c4   : > { %v2538_v53 = vmul.f32 %v4491_v47, %v2530_v62 }
0x19c6   : > { %v2543_v50 = vmul.f32 %v3901_v48, %v2538_v53 }
0x19c8   : > { %v2548_v51 = vadd.f32 %v3902_v49, %v2543_v50 }
0x19ca   : > { %4309 = vmatmul.mubr.msk.f32.vlgmr.msra.gmra.mxu1 %vm327_vm0, %v2548_v51 }
0x19cb   : > { %4313 = vmatprep.mubr.msk.f32.mxu1 %vm4527_vm1, %v4526_v8 }
0x1a8a   : > { %v2622_v54 = vpop.f32.mrf.mxu1 }
0x1a8b   : > { %v5160_v55 = vadd.f32 %v3903_v52, %v2622_v54 }
0x1a8c   : > { %v4310_v56 = vpop.f32.mrf.mxu1 }
0x1a8d   : > { %2627 = vrot.lane.b32.xlu0 %v5160_v55, %s4529_s18 }
0x1a91   : > { %2794 = vrot.lane.b32.xlu0 %v5160_v55, %s4530_s19  ;;  %s277_s19 = scalar_lea.vmem %s5407_s6, %s4591_s23 }
0x1aff   : > { %v2628_v11 = vpop.permute.xlu0 %2627 }
0x1b00   : > { %4312 = vmatpush3.xpose.msk.msra.mxu1 %vm432_vm2, %v2628_v11 }
0x1b01   : > { %4316 = vmatprep.subr.mxu1 %v4526_v8 }
0x1b03   : > { %4314 = vmatmul.mubr.msk.f32.vlgmr.msra.gmra.mxu1 %vm432_vm2, %v5160_v55  ;;  %v2795_v17 = vpop.permute.xlu0 %2794 }
0x1b04   : > { %4318 = vmatprep.mubr.msk.f32.mxu1 %vm4527_vm1, %v4526_v8 }
0x1bc3   : > { %v2699_v57 = vpop.f32.mrf.mxu1 }
0x1bc4   : > { %v2703_v58 = vmul.f32 0.35355338, %v2699_v57 }
0x1bc5   : > { %v4315_v63 = vpop.f32.mrf.mxu1 }
0x1bc6   : > { %v2704_v1 = vadd.f32 %v2703_v58, %v4671_v36 }
0x1bc8   : > { %v2705_v2 = vsel %vm432_vm2, %v2704_v1, -inf }
0x1bc9   : > { %2706 = vmax.xlane.f32.xlu1 %v2705_v2 }
0x1bda   : > { %2716 = vrot.lane.b32.xlu1 %v5160_v55, %s4528_s17  ;;  %s5412_s17 = smov 16  }
0x1c52   : > { %v2707_v3 = vpop.xlane.xlu1 %2706 }
0x1c53   : > { %v2708_v4 = vsub.f32 %v2704_v1, %v2707_v3 }
0x1c55   : > { %v2709_v0 = vmul.f32 1.442695, %v2708_v4 }
0x1c56   : > { %v2717_v5 = vpop.permute.xlu1 %2716 }
0x1c57   : > { %4492 = vpow2.f32 %v2709_v0  ;;  %4317 = vmatpush3.msra.mxu1 %v2717_v5 }
0x1c58   : > { %4321 = vmatprep.subr.mxu1 %v4526_v8 }
0x1c64   : > { %v4493_v6 = vpop.eup %4492 }
0x1c65   : > { %v2711_v12 = vsel %vm432_vm2, %v4493_v6, 0.0 }
0x1c66   : > { %2712 = vadd.xlane.f32.xlu1 %v2711_v12 }
0x1c77   : > { %2792 = vrot.lane.b32.xlu1 %v5160_v55, %s4534_s26 }
0x1c7b   : > { %2961 = vrot.lane.b32.xlu1 %v5160_v55, %s4533_s22 }
0x1cef   : > { %v2713_v13 = vpop.xlane.xlu1 %2712 }
0x1cf0   : > { %4494 = vrcp.f32 %v2713_v13 }
0x1cf3   : > { %v2793_v18 = vpop.permute.xlu1 %2792 }
0x1cf7   : > { %v2962_v15 = vpop.permute.xlu1 %2961 }
0x1cfd   : > { %v4495_v14 = vpop.eup %4494 }
0x1cfe   : > { %v2715_v16 = vmul.f32 %v4495_v14, %v4493_v6 }
0x1d00   : > { %4319 = vmatmul.mubr.msk.f32.vlgmr.msra.gmra.mxu1 %vm432_vm2, %v2715_v16 }
0x1d01   : > { %4322 = vmatpush3.xpose.msk.msra.mxu1 %vm432_vm2, %v2795_v17  ;;  %4323 = vmatprep.mubr.msk.f32.mxu1 %vm4527_vm1, %v4526_v8 }
0x1d02   : > { %4326 = vmatprep.subr.mxu1 %v4526_v8 }
0x1d04   : > { %4324 = vmatmul.mubr.msk.f32.vlgmr.msra.gmra.mxu1 %vm432_vm2, %v2793_v18 }
0x1d05   : > { %4328 = vmatprep.mubr.msk.f32.mxu1 %vm4527_vm1, %v4526_v8 }
0x1dc0   : > { %v5190_v19 = vpop.f32.mrf.mxu1 }
0x1dc2   : > { %v4320_v59 = vpop.f32.mrf.mxu1 }
0x1dc4   : > { %v2866_v60 = vpop.f32.mrf.mxu1 }
0x1dc5   : > { %v2870_v20 = vmul.f32 0.35355338, %v2866_v60 }
0x1dc6   : > { %v4325_v21 = vpop.f32.mrf.mxu1 }
0x1dc7   : > { %v2871_v22 = vadd.f32 %v2870_v20, %v4671_v36 }
0x1dc9   : > { %v2872_v24 = vsel %vm432_vm2, %v2871_v22, -inf }
0x1dca   : > { %2873 = vmax.xlane.f32.xlu0 %v2872_v24 }
0x1de0   : > { %2883 = vrot.lane.b32.xlu0 %v5160_v55, %s4539_s7 }
0x1de4   : > { %2959 = vrot.lane.b32.xlu0 %v5160_v55, %s4535_s27 }
0x1de8   : > { %3126 = vrot.lane.b32.xlu0 %v5160_v55, %s4537_s29 }
0x1e53   : > { %v2874_v25 = vpop.xlane.xlu0 %2873 }
0x1e54   : > { %v2875_v26 = vsub.f32 %v2871_v22, %v2874_v25 }
0x1e56   : > { %v2876_v27 = vmul.f32 1.442695, %v2875_v26 }
0x1e57   : > { %v2884_v28 = vpop.permute.xlu0 %2883 }
0x1e58   : > { %4496 = vpow2.f32 %v2876_v27  ;;  %4327 = vmatpush3.msra.mxu1 %v2884_v28 }
0x1e59   : > { %4331 = vmatprep.subr.mxu1 %v4526_v8 }
0x1e5b   : > { %v2960_v31 = vpop.permute.xlu0 %2959 }
0x1e5f   : > { %v3127_v34 = vpop.permute.xlu0 %3126 }
0x1e65   : > { %v4497_v29 = vpop.eup %4496 }
0x1e66   : > { %v2878_v61 = vsel %vm432_vm2, %v4497_v29, 0.0 }
0x1e67   : > { %2879 = vadd.xlane.f32.xlu1 %v2878_v61 }
0x1e78   : > { %3128 = vrot.lane.b32.xlu1 %v5160_v55, %s4536_s28 }
0x1ef0   : > { %v2880_v30 = vpop.xlane.xlu1 %2879 }
0x1ef1   : > { %4498 = vrcp.f32 %v2880_v30  ;;  %v3884_v30 = vld [vmem:[%s5405_s4 + $0xb8] sm:$0xff] }
0x1ef4   : > { %v3129_v32 = vpop.permute.xlu1 %3128 }
0x1ef5   : > { %4342 = vmatpush3.xpose.msk.msra.mxu0 %vm432_vm2, %v3129_v32  ;;  %v3881_v32 = vld [vmem:[%s5405_s4 + $0xa0] sm:$0xff] }
0x1ef6   : > { %4351 = vmatprep.subr.mxu0 %v4526_v8 }
0x1ef8   : > { %4344 = vmatmul.mubr.msk.f32.vlgmr.msra.gmra.mxu0 %vm432_vm2, %v3127_v34 }
0x1ef9   : > { %4359 = vmatprep.mubr.msk.f32.mxu0 %vm4527_vm1, %v4526_v8 }
0x1efe   : > { %v4499_v35 = vpop.eup %4498 }
0x1eff   : > { %v2882_v37 = vmul.f32 %v4499_v35, %v4497_v29 }
0x1f01   : > { %4329 = vmatmul.mubr.msk.f32.vlgmr.msra.gmra.mxu1 %vm432_vm2, %v2882_v37 }
0x1f02   : > { %4332 = vmatpush3.xpose.msk.msra.mxu1 %vm432_vm2, %v2962_v15  ;;  %4333 = vmatprep.mubr.msk.f32.mxu1 %vm4527_vm1, %v4526_v8 }
0x1f03   : > { %4336 = vmatprep.subr.mxu1 %v4526_v8 }
0x1f05   : > { %4334 = vmatmul.mubr.msk.f32.vlgmr.msra.gmra.mxu1 %vm432_vm2, %v2960_v31  ;;  %v3882_v31 = vld [vmem:[%s5405_s4 + $0xa8] sm:$0xff] }
0x1f06   : > { %4338 = vmatprep.mubr.msk.f32.mxu1 %vm4527_vm1, %v4526_v8 }
0x1fb8   : > { %v3200_v7 = vpop.f32.mrf.mxu0 }
0x1fb9   : > { %v3204_v9 = vmul.f32 0.35355338, %v3200_v7 }
0x1fba   : > { %v4345_v10 = vpop.f32.mrf.mxu0 }
0x1fbb   : > { %v3205_v62 = vadd.f32 %v3204_v9, %v4671_v36  ;;  %v3919_v9 = vld [vmem:[%s5404_s3 + $0x12] ss:$0 sm:$0xff] }
0x1fbd   : > { %v3206_v39 = vsel %vm432_vm2, %v3205_v62, -inf }
0x1fbe   : > { %3207 = vmax.xlane.f32.xlu0 %v3206_v39 }
0x1fc1   : > { %v2955_v23 = vpop.f32.mrf.mxu1 }
0x1fc3   : > { %v4330_v44 = vpop.f32.mrf.mxu1 }
0x1fc4   : > { %v3900_v44 = vld [vmem:[%s5406_s5 + $0x178] sm:$0xff] }
0x1fc5   : > { %v3033_v45 = vpop.f32.mrf.mxu1 }
0x1fc6   : > { %v3037_v46 = vmul.f32 0.35355338, %v3033_v45  ;;  %v3899_v45 = vld [vmem:[%s5406_s5 + $0x170] sm:$0xff] }
0x1fc7   : > { %v4335_v47 = vpop.f32.mrf.mxu1 }
0x1fc8   : > { %v3038_v48 = vadd.f32 %v3037_v46, %v4671_v36  ;;  %v3898_v46 = vld [vmem:[%s5406_s5 + $0x168] sm:$0xff]  ;;  %v3897_v47 = vld [vmem:[%s5406_s5 + $0x160] sm:$0xff] }
0x1fca   : > { %v3039_v53 = vsel %vm432_vm2, %v3038_v48, -inf }
0x1fcb   : > { %3040 = vmax.xlane.f32.xlu1 %v3039_v53  ;;  %v3895_v53 = vld [vmem:[%s5406_s5 + $0x150] sm:$0xff] }
0x1fdc   : > { %3050 = vrot.lane.b32.xlu1 %v5160_v55, %s4538_s30 }
0x1fe0   : > { %3318 = vrot.lane.b32.xlu1 %v5123_v40, %s4541_s9 }
0x1fe4   : > { %3316 = vrot.lane.b32.xlu1 %v5129_v41, %s4541_s9 }
0x1fe8   : > { %3294 = vrot.lane.b32.xlu1 %v2955_v23, %s4542_s10 }
0x2047   : > { %v3208_v49 = vpop.xlane.xlu0 %3207 }
0x2048   : > { %v3209_v50 = vsub.f32 %v3205_v62, %v3208_v49  ;;  %v3920_v62 = vld [vmem:[%s5404_s3 + $0x13] ss:$0 sm:$0xff]  ;;  %v3894_v49 = vld [vmem:[%s5406_s5 + $0x148] sm:$0xff] }
0x204a   : > { %v3210_v51 = vmul.f32 1.442695, %v3209_v50  ;;  %v3893_v50 = vld [vmem:[%s5406_s5 + $0x140] sm:$0xff] }
0x204c   : > { %4500 = vpow2.f32 %v3210_v51  ;;  %v3892_v51 = vld [vmem:[%s5406_s5 + $0x138] sm:$0xff] }
0x2054   : > { %v3041_v52 = vpop.xlane.xlu1 %3040 }
0x2055   : > { %v3042_v36 = vsub.f32 %v3038_v48, %v3041_v52  ;;  %v3896_v48 = vld [vmem:[%s5406_s5 + $0x158] sm:$0xff]  ;;  %v3891_v52 = vld [vmem:[%s5406_s5 + $0x130] sm:$0xff] }
0x2057   : > { %v3043_v54 = vmul.f32 1.442695, %v3042_v36  ;;  %v3890_v36 = vld [vmem:[%s5406_s5 + $0x128] sm:$0xff] }
0x2058   : > { %v3051_v56 = vpop.permute.xlu1 %3050 }
0x2059   : > { %v4501_v11 = vpop.eup %4500  ;;  %4502 = vpow2.f32 %v3043_v54  ;;  %4337 = vmatpush3.msra.mxu1 %v3051_v56  ;;  %v3889_v54 = vld [vmem:[%s5406_s5 + $0x120] sm:$0xff]  ;;  %v3888_v56 = vld [vmem:[%s5406_s5 + $0x118] sm:$0xff] }
0x205a   : > { %v3212_v57 = vsel %vm432_vm2, %v4501_v11, 0.0  ;;  %4346 = vmatprep.subr.mxu1 %v4526_v8 }
0x205b   : > { %3213 = vadd.xlane.f32.xlu0 %v3212_v57  ;;  %v3886_v57 = vld [vmem:[%s5406_s5 + $0x108] sm:$0xff] }
0x205c   : > { %v3319_v40 = vpop.permute.xlu1 %3318 }
0x205d   : > { %4352 = vmatpush3.msra.mxu0 %v3319_v40  ;;  %v3885_v40 = vld [vmem:[%s5406_s5 + $0x100] sm:$0xff] }
0x205e   : > { %4353 = vmatprep.subr.mxu0 %v4526_v8 }
0x2060   : > { %v3317_v41 = vpop.permute.xlu1 %3316 }
0x2061   : > { %4354 = vmatpush3.msra.mxu0 %v3317_v41  ;;  %v3921_v41 = vld [vmem:[%s5404_s3 + $0x16] ss:$0 sm:$0xff] }
0x2062   : > { %4355 = vmatprep.subr.mxu0 %v4526_v8 }
0x2064   : > { %v3295_v16 = vpop.permute.xlu1 %3294 }
0x2065   : > { %v3305_v18 = vsel %vm432_vm2, %v5190_v19, %v3295_v16 }
0x2066   : > { %v4503_v58 = vpop.eup %4502 }
0x2067   : > { %v3045_v63 = vsel %vm432_vm2, %v4503_v58, 0.0 }
0x2068   : > { %3046 = vadd.xlane.f32.xlu0 %v3045_v63 }
0x207e   : > { %3217 = vrot.lane.b32.xlu0 %v5160_v55, %s4540_s8 }
0x2082   : > { %3314 = vrot.lane.b32.xlu0 %v5135_v42, %s4541_s9 }
0x20e4   : > { %v3214_v1 = vpop.xlane.xlu0 %3213 }
0x20f1   : > { %v3047_v2 = vpop.xlane.xlu0 %3046 }
0x20f2   : > { %4504 = vrcp.f32 %v3047_v2 }
0x20f3   : > { %4506 = vrcp.f32 %v3214_v1 }
0x20f5   : > { %v3218_v5 = vpop.permute.xlu0 %3217 }
0x20f9   : > { %v3315_v42 = vpop.permute.xlu0 %3314 }
0x20fa   : > { %4356 = vmatpush3.msra.mxu0 %v3315_v42 }
0x20fb   : > { %4357 = vmatprep.subr.mxu0 %v4526_v8 }
0x20ff   : > { %v4505_v3 = vpop.eup %4504 }
0x2100   : > { %v3049_v4 = vmul.f32 %v4505_v3, %v4503_v58  ;;  %v4507_v0 = vpop.eup %4506 }
0x2101   : > { %v3216_v6 = vmul.f32 %v4507_v0, %v4501_v11  ;;  %v3887_v11 = vld [vmem:[%s5406_s5 + $0x110] sm:$0xff] }
0x2102   : > { %4339 = vmatmul.mubr.msk.f32.vlgmr.msra.gmra.mxu1 %vm432_vm2, %v3049_v4 }
0x2103   : > { %4347 = vmatpush3.msra.mxu1 %v3218_v5  ;;  %4348 = vmatprep.mubr.msk.f32.mxu1 %vm4527_vm1, %v4526_v8 }
0x2104   : > { %4362 = vmatprep.subr.mxu1 %v4526_v8 }
0x2106   : > { %4349 = vmatmul.mubr.msk.f32.vlgmr.msra.gmra.mxu1 %vm432_vm2, %v3216_v6 }
0x2107   : > { %4370 = vmatprep.mubr.msk.f32.mxu1 %vm4527_vm1, %v4526_v8  ;;  %4363 = vmatpush3.msra.mxu1 %v3884_v30 }
0x2108   : > { %4364 = vmatprep.subr.mxu1 %v4526_v8 }
0x21c2   : > { %v3122_v55 = vpop.f32.mrf.mxu1 }
0x21c3   : > { %3298 = vrot.lane.b32.xlu1 %v3122_v55, %s5412_s17 }
0x21c4   : > { %v4340_v12 = vpop.f32.mrf.mxu1 }
0x21c6   : > { %v3289_v13 = vpop.f32.mrf.mxu1 }
0x21c7   : > { %3312 = vrot.lane.b32.xlu1 %v5142_v43, %s4541_s9  ;;  %3302 = vrot.lane.b32.xlu0 %v3289_v13, %s5411_s13  ;;  %v3918_v43 = vld [vmem:[%s5404_s3 + $0x15] ss:$0 sm:$0xff] }
0x21c8   : > { %v4350_v14 = vpop.f32.mrf.mxu1 }
0x21c9   : > { %v3923_v14 = vld [vmem:[%s5404_s3 + $0x17] ss:$0 sm:$0xff] }
0x2235   : > { %v3299_v17 = vpop.permute.xlu1 %3298 }
0x2236   : > { %v3306_v59 = vsel %vm1110_vm7, %v3305_v18, %v3299_v17 }
0x2239   : > { %v3313_v60 = vpop.permute.xlu1 %3312  ;;  %v3303_v20 = vpop.permute.xlu0 %3302 }
0x223a   : > { %v3307_v21 = vsel %vm1112_vm8, %v3306_v59, %v3303_v20  ;;  %4358 = vmatpush3.msra.mxu0 %v3313_v60 }
0x223b   : > { %4360 = vmatmul.mubr.msk.f32.vlgmr.msra.gmra.mxu0 %vm327_vm0, %v3307_v21  ;;  %4373 = vmatprep.subr.mxu0 %v4526_v8 }
0x223c   : > { %4405 = vmatprep.mubr.msk.f32.mxu0 %vm4527_vm1, %v4526_v8  ;;  %4374 = vmatpush3.msra.mxu0 %v3900_v44 }
0x223d   : > { %4375 = vmatprep.subr.mxu0 %v4526_v8 }
0x223e   : > { %4376 = vmatpush3.msra.mxu0 %v3899_v45 }
0x223f   : > { %4377 = vmatprep.subr.mxu0 %v4526_v8 }
0x2240   : > { %4378 = vmatpush3.msra.mxu0 %v3898_v46 }
0x2241   : > { %4379 = vmatprep.subr.mxu0 %v4526_v8 }
0x2242   : > { %4380 = vmatpush3.msra.mxu0 %v3897_v47 }
0x2243   : > { %4381 = vmatprep.subr.mxu0 %v4526_v8 }
0x2244   : > { %4382 = vmatpush3.msra.mxu0 %v3896_v48 }
0x2245   : > { %4383 = vmatprep.subr.mxu0 %v4526_v8 }
0x2246   : > { %4384 = vmatpush3.msra.mxu0 %v3895_v53 }
0x2247   : > { %4385 = vmatprep.subr.mxu0 %v4526_v8 }
0x2248   : > { %4386 = vmatpush3.msra.mxu0 %v3894_v49 }
0x2249   : > { %4387 = vmatprep.subr.mxu0 %v4526_v8 }
0x224a   : > { %4388 = vmatpush3.msra.mxu0 %v3893_v50 }
0x224b   : > { %4389 = vmatprep.subr.mxu0 %v4526_v8 }
0x224c   : > { %4390 = vmatpush3.msra.mxu0 %v3892_v51  ;;  %v3931_v51 = vsel %vm3692_vm9, 1.0, %v4526_v8 }
0x224d   : > { %4391 = vmatprep.subr.mxu0 %v4526_v8 }
0x224e   : > { %4392 = vmatpush3.msra.mxu0 %v3891_v52 }
0x224f   : > { %4393 = vmatprep.subr.mxu0 %v4526_v8 }
0x2250   : > { %4394 = vmatpush3.msra.mxu0 %v3890_v36 }
0x2251   : > { %4395 = vmatprep.subr.mxu0 %v4526_v8 }
0x2252   : > { %4396 = vmatpush3.msra.mxu0 %v3889_v54 }
0x2253   : > { %4397 = vmatprep.subr.mxu0 %v4526_v8 }
0x2254   : > { %4398 = vmatpush3.msra.mxu0 %v3888_v56  ;;  %v3932_v56 = vsel %vm3715_vm11, 1.0, %v4526_v8 }
0x2255   : > { %4399 = vmatprep.subr.mxu0 %v4526_v8 }
0x2256   : > { %4400 = vmatpush3.msra.mxu0 %v3887_v11 }
0x2257   : > { %4401 = vmatprep.subr.mxu0 %v4526_v8 }
0x2258   : > { %4402 = vmatpush3.msra.mxu0 %v3886_v57 }
0x2259   : > { %4403 = vmatprep.subr.mxu0 %v4526_v8 }
0x225a   : > { %4404 = vmatpush3.msra.mxu0 %v3885_v40 }
0x22fb   : > { %v3393_v22 = vpop.f32.mrf.mxu0 }
0x22fc   : > { %v3397_v19 = vadd.f32 %v3393_v22, %v5114_v38  ;;  %v3883_v38 = vld [vmem:[%s5405_s4 + $0xb0] sm:$0xff] }
0x22fd   : > { %v4361_v24 = vpop.f32.mrf.mxu0  ;;  %4365 = vmatpush3.msra.mxu1 %v3883_v38  ;;  %v3925_v38 = vld [vmem:[%s5404_s3 + $0x19] ss:$0 sm:$0xff] }
0x22fe   : > { %v5261_v25 = vadd.f32 %v3918_v43, %v3397_v19  ;;  %4366 = vmatprep.subr.mxu1 %v4526_v8  ;;  %v3929_v19 = vld [vmem:[%s5405_s4 + $0xd8] sm:$0xff]  ;;  %v3928_v24 = vld [vmem:[%s5405_s4 + $0xd0] sm:$0xff] }
0x22ff   : > { %4367 = vmatpush3.msra.mxu1 %v3882_v31 }
0x2300   : > { %v3403_v26 = vsel %vm327_vm0, %v5261_v25, 0.0  ;;  %4368 = vmatprep.subr.mxu1 %v4526_v8 }
0x2301   : > { %3404 = vadd.xlane.f32.xlu0 %v3403_v26  ;;  %4369 = vmatpush3.msra.mxu1 %v3881_v32  ;;  %v3926_v26 = vld [vmem:[%s5405_s4 + $0xc0] sm:$0xff] }
0x2302   : > { %4408 = vmatprep.subr.mxu1 %v4526_v8 }
0x238a   : > { %v3405_v27 = vpop.xlane.xlu0 %3404 }
0x238b   : > { %v3406_v28 = vmul.f32 0.03125, %v3405_v27 }
0x238d   : > { %v3407_v29 = vsub.f32 %v5261_v25, %v3406_v28 }
0x238f   : > { %v3408_v61 = vmul.f32 %v3407_v29, %v3407_v29 }
0x2391   : > { %v3409_v15 = vsel %vm327_vm0, %v3408_v61, 0.0 }
0x2392   : > { %3410 = vadd.xlane.f32.xlu1 %v3409_v15  ;;  %v3924_v15 = vld [vmem:[%s5404_s3 + $0x18] ss:$0 sm:$0xff] }
0x241b   : > { %v3411_v34 = vpop.xlane.xlu1 %3410 }
0x241c   : > { %v3412_v35 = vmul.f32 0.03125, %v3411_v34 }
0x241e   : > { %v3413_v37 = vadd.f32 1e-05, %v3412_v35 }
0x2420   : > { %4508 = vrsqrt.f32 %v3413_v37 }
0x242d   : > { %v4509_v7 = vpop.eup %4508 }
0x242e   : > { %v3415_v10 = vmul.f32 %v4509_v7, %v3407_v29 }
0x2430   : > { %v3420_v39 = vmul.f32 %v3919_v9, %v3415_v10 }
0x2432   : > { %v3425_v23 = vadd.f32 %v3920_v62, %v3420_v39 }
0x2434   : > { %4371 = vmatmul.mubr.msk.f32.vlgmr.msra.gmra.mxu1 %vm327_vm0, %v3425_v23  ;;  %v3691_v23 = vld [vmem:[%s273_s25] sm:$0xff] }
0x2435   : > { %4416 = vmatprep.mubr.msk.f32.mxu1 %vm4527_vm1, %v4526_v8  ;;  %4409 = vmatpush3.msra.mxu1 %v3929_v19 }
0x2436   : > { %4410 = vmatprep.subr.mxu1 %v4526_v8 }
0x2437   : > { %4411 = vmatpush3.msra.mxu1 %v3928_v24 }
0x2438   : > { %4412 = vmatprep.subr.mxu1 %v4526_v8 }
0x24f4   : > { %v3499_v58 = vpop.f32.mrf.mxu1 }
0x24f5   : > { %v3500_v63 = vadd.f32 %v3921_v41, %v3499_v58 }
0x24f6   : > { %v4372_v1 = vpop.f32.mrf.mxu1 }
0x24f7   : > { %v3504_v2 = vmul.f32 0.044715, %v3500_v63  ;;  %v3503_v42 = vmul.f32 0.5, %v3500_v63 }
0x24f9   : > { %v3505_v3 = vmul.f32 %v3504_v2, %v3500_v63 }
0x24fb   : > { %v3506_v4 = vmul.f32 %v3505_v3, %v3500_v63 }
0x24fd   : > { %v3507_v0 = vadd.f32 %v3506_v4, %v3500_v63 }
0x24ff   : > { %v3508_v5 = vmul.f32 0.7978846, %v3507_v0 }
0x2501   : > { %4510 = vtanh.f32 %v3508_v5 }
0x250e   : > { %v4511_v6 = vpop.eup %4510 }
0x250f   : > { %v3510_v55 = vadd.f32 1.0, %v4511_v6 }
0x2511   : > { %v3511_v12 = vmul.f32 %v3510_v55, %v3503_v42 }
0x2513   : > { %4406 = vmatmul.mubr.f32.vlgmr.msra.gmra.mxu0 %v3511_v12 }
0x25d3   : > { %v3578_v13 = vpop.f32.mrf.mxu0 }
0x25d4   : > { %v3582_v16 = vadd.f32 %v3578_v13, %v5261_v25  ;;  %v3927_v25 = vld [vmem:[%s5405_s4 + $0xc8] sm:$0xff] }
0x25d5   : > { %v4407_v17 = vpop.f32.mrf.mxu0  ;;  %4413 = vmatpush3.msra.mxu1 %v3927_v25 }
0x25d6   : > { %v3587_v18 = vadd.f32 %v3923_v14, %v3582_v16  ;;  %4414 = vmatprep.subr.mxu1 %v4526_v8 }
0x25d7   : > { %4415 = vmatpush3.msra.mxu1 %v3926_v26 }
0x25d8   : > { %v3590_v59 = vsel %vm327_vm0, %v3587_v18, 0.0 }
0x25d9   : > { %3591 = vadd.xlane.f32.xlu0 %v3590_v59 }
0x2662   : > { %v3592_v60 = vpop.xlane.xlu0 %3591 }
0x2663   : > { %v3593_v20 = vmul.f32 0.03125, %v3592_v60 }
0x2665   : > { %v3594_v21 = vsub.f32 %v3587_v18, %v3593_v20 }
0x2667   : > { %v3595_v43 = vmul.f32 %v3594_v21, %v3594_v21 }
0x2669   : > { %v3596_v22 = vsel %vm327_vm0, %v3595_v43, 0.0 }
0x266a   : > { %3597 = vadd.xlane.f32.xlu0 %v3596_v22 }
0x26f3   : > { %v3598_v27 = vpop.xlane.xlu0 %3597 }
0x26f4   : > { %v3599_v28 = vmul.f32 0.03125, %v3598_v27 }
0x26f6   : > { %v3600_v29 = vadd.f32 1e-05, %v3599_v28 }
0x26f8   : > { %4512 = vrsqrt.f32 %v3600_v29 }
0x2705   : > { %v4513_v61 = vpop.eup %4512 }
0x2706   : > { %v3602_v30 = vmul.f32 %v4513_v61, %v3594_v21 }
0x2708   : > { %v3607_v31 = vmul.f32 %v3924_v15, %v3602_v30 }
0x270a   : > { %v3612_v32 = vadd.f32 %v3925_v38, %v3607_v31 }
0x270c   : > { %4417 = vmatmul.mubr.msk.f32.vlgmr.msra.gmra.mxu1 %vm327_vm0, %v3612_v32 }
0x27cc   : > { %v3687_v34 = vpop.f32.mrf.mxu1 }
0x27cd   : > { %v3698_v35 = vand.u32 2147483647, %v3687_v34  ;;  %v3695_v45 = vmax.f32 %v3687_v34, 0.0  ;;  %v3696_v46 = vmul.f32 %v3691_v23, %v3687_v34 }
0x27ce   : > { %v4418_v37 = vpop.f32.mrf.mxu1 }
0x27cf   : > { %v3699_v7 = vsub.f32 0.0, %v3698_v35  ;;  %v3697_v50 = vsub.f32 %v3695_v45, %v3696_v46 }
0x27d1   : > { %v3700_v9 = vmul.f32 1.442695, %v3699_v7 }
0x27d3   : > { %4514 = vpow2.f32 %v3700_v9 }
0x27e0   : > { %v4515_v10 = vpop.eup %4514 }
0x27e1   : > { %v3702_v62 = vadd.f32 1.0, %v4515_v10  ;;  %v3705_v39 = vmul.f32 -0.5, %v4515_v10  ;;  %v3708_v47 = vand.u32 2147483647, %v4515_v10 }
0x27e3   : > { %4516 = vlog2.f32 %v3702_v62  ;;  %v3706_v44 = vadd.f32 1.0, %v3705_v39  ;;  %vm3709_vm10 = vcmp.lt.f32.partialorder %v3708_v47, 0.0004427343 }
0x27e5   : > { %v3707_v49 = vmul.f32 %v4515_v10, %v3706_v44 }
0x27f0   : > { %v4517_v48 = vpop.eup %4516 }
0x27f1   : > { %v3704_v53 = vmul.f32 0.6931472, %v4517_v48 }
0x27f3   : > { %v3710_v52 = vsel %vm3709_vm10, %v3707_v49, %v3704_v53 }
0x27f4   : > { %v3711_v36 = vadd.f32 %v3710_v52, %v3697_v50 }
0x27f6   : > { %v3712_v54 = vmul.f32 %v3931_v51, %v3711_v36 }
0x27f8   : > { %3713 = vadd.xlane.f32.xlu0 %v3712_v54 }
0x2881   : > { %v3714_v11 = vpop.xlane.xlu0 %3713 }
0x2882   : > { %v3718_v57 = vmul.f32 %v3932_v56, %v3714_v11 }
0x2884   : > { %v3719_v40 = vadd.f32 %v3718_v57, %v3687_v34 }
0x2886   : > { %3720 = vst [vmem:[%s277_s19] sm:$0xff] %v3719_v40 }
0x2887 PF: > { %s16_s21 = sadd.s32 1, %s4524_s21  }
0x2888   : > { %p13_p4 = scmp.ge.s32.totalorder %s16_s21, 4  }
0x288a   :  { %15 = sbr.rel (!%p13_p4) target bundleno = 1 (0x1), region = 88 }

</bundles_post_ra>
